<compile_context>
chip_gen: v7x
topology: tpu7x:2x2x1
jax: 0.10.0
libtpu: 0.0.40
codegen_flags: <defaults>
</compile_context>

<pallas_src>
import jax
import jax.numpy as jnp
from jax.experimental import pallas as pl
from jax.experimental.pallas import tpu as pltpu


def _matmul_kernel_acc_in_out(a_ref, b_ref, o_ref):
    """Accumulate directly into the (f32) output block resident across the K axis."""
    k = pl.program_id(2)
    partial = jnp.dot(a_ref[...], b_ref[...], preferred_element_type=jnp.float32)

    @pl.when(k == 0)
    def _():
        o_ref[...] = partial  # first K step: write, no zero-fill / RMW

    @pl.when(k != 0)
    def _():
        o_ref[...] += partial


def _matmul_kernel_scratch(a_ref, b_ref, o_ref, acc_ref):
    """General path: f32 scratch accumulator, cast to output dtype at the end."""
    k = pl.program_id(2)
    partial = jnp.dot(a_ref[...], b_ref[...], preferred_element_type=jnp.float32)

    @pl.when(k == 0)
    def _():
        acc_ref[...] = partial

    @pl.when(k != 0)
    def _():
        acc_ref[...] += partial

    @pl.when(k == pl.num_programs(2) - 1)
    def _():
        o_ref[...] = acc_ref[...].astype(o_ref.dtype)


def _num_tensorcores_per_device() -> int:
    """2 on v7x (and megacore v4/v5p), else 1. Best-effort; falls back to 1."""
    try:
        kind = jax.devices()[0].device_kind.lower()
    except Exception:
        return 1
    if "v7" in kind or "7x" in kind or "v4" in kind or "v5p" in kind:
        return 2
    return 1


def matmul(
    a: jax.Array,
    b: jax.Array,
    *,
    tm: int = 512,
    tn: int = 512,
    tk: int = 512,
    cast_inputs_to_bf16: bool = False,
):
    M, K = a.shape
    K2, N = b.shape
    assert K == K2, f"inner dims must match, got {K} vs {K2}"

    out_dtype = jnp.result_type(a.dtype, b.dtype)

    if cast_inputs_to_bf16:
        # Optional precision/bandwidth trade-off (f32 accumulation is preserved).
        a = a.astype(jnp.bfloat16)
        b = b.astype(jnp.bfloat16)

    # Clamp tiles to the actual problem size.
    tm = min(tm, M)
    tn = min(tn, N)
    tk = min(tk, K)

    # If the output collapses to a single (tm, tn) tile but the device has two
    # TensorCores, split M so both cores get a "parallel" grid slice to work on.
    if (
        _num_tensorcores_per_device() >= 2
        and M // tm == 1
        and N // tn == 1
        and tm % 2 == 0
        and (tm // 2) % 8 == 0
        and M % (tm // 2) == 0
    ):
        tm //= 2

    assert M % tm == 0 and N % tn == 0 and K % tk == 0, (
        "shapes must be divisible by tile sizes "
        f"(M={M}, N={N}, K={K}, tm={tm}, tn={tn}, tk={tk})"
    )

    grid = (M // tm, N // tn, K // tk)

    # HBM traffic including re-streaming: A is read once per N-tile, B once per M-tile.
    cost = pl.CostEstimate(
        flops=2 * M * N * K,
        transcendentals=0,
        bytes_accessed=(
            M * K * a.dtype.itemsize * (N // tn)
            + K * N * b.dtype.itemsize * (M // tm)
            + M * N * jnp.dtype(out_dtype).itemsize
        ),
    )

    in_specs = [
        pl.BlockSpec((tm, tk), lambda i, j, k: (i, k)),
        pl.BlockSpec((tk, tn), lambda i, j, k: (k, j)),
    ]
    out_spec = pl.BlockSpec((tm, tn), lambda i, j, k: (i, j))

    if out_dtype == jnp.float32:
        # Accumulate directly into the output block (no extra scratch, no final copy).
        kernel = _matmul_kernel_acc_in_out
        scratch_shapes = []
    else:
        kernel = _matmul_kernel_scratch
        scratch_shapes = [pltpu.VMEM((tm, tn), jnp.float32)]

    return pl.pallas_call(
        kernel,
        out_shape=jax.ShapeDtypeStruct((M, N), out_dtype),
        grid_spec=pltpu.PrefetchScalarGridSpec(
            num_scalar_prefetch=0,
            grid=grid,
            in_specs=in_specs,
            out_specs=out_spec,
            scratch_shapes=scratch_shapes,
        ),
        compiler_params=pltpu.CompilerParams(
            dimension_semantics=("parallel", "parallel", "arbitrary"),
            # 48 MiB: raises the default scoped limit on v5e/v6e but leaves headroom
            # below v7x's 64 MiB physical VMEM per TensorCore.
            vmem_limit_bytes=48 << 20,
        ),
        cost_estimate=cost,
    )(a, b)


if __name__ == "__main__":
    # Small shapes consistent with (M, K) x (K, N); K chosen larger than M, N
    # to echo the "large K" flavor of the original module.
    M, K, N = 256, 4096, 256

    key = jax.random.PRNGKey(0)
    ka, kb = jax.random.split(key)
    A = jax.random.normal(ka, (M, K), dtype=jnp.float32)
    B = jax.random.normal(kb, (K, N), dtype=jnp.float32)

    C = matmul(A, B)
    C = jax.block_until_ready(C)

    # Verify against plain JAX reference.
    C_ref = jnp.dot(A, B)
    assert C.shape == (M, N)
    assert jnp.allclose(C, C_ref, atol=1e-2, rtol=1e-3), "mismatch vs reference"

    print("KERNEL_OK")
</pallas_src>

<mosaic_0001>
module attributes {stable_mosaic.version = 11 : i64} {
  func.func @_matmul_kernel_acc_in_out(%arg0: i32, %arg1: i32, %arg2: i32, %arg3: memref<256x512xf32, #tpu.memory_space<vmem>>, %arg4: memref<512x256xf32, #tpu.memory_space<vmem>>, %arg5: memref<256x256xf32, #tpu.memory_space<vmem>>) attributes {dimension_semantics = [#tpu.dimension_semantics<parallel>, #tpu.dimension_semantics<parallel>, #tpu.dimension_semantics<arbitrary>], iteration_bounds = array<i64: 1, 1, 8>, scalar_prefetch = 0 : i64, scratch_operands = 0 : i64, tpu.core_type = #tpu.core_type<tc>, window_params = [{transform_indices = @transform_0, window_bounds = array<i64: 256, 512>}, {transform_indices = @transform_1, window_bounds = array<i64: 512, 256>}, {transform_indices = @transform_2, window_bounds = array<i64: 256, 256>}]} {
    %c0 = arith.constant 0 : index
    %c0_0 = arith.constant 0 : index
    %0 = vector.load %arg3[%c0, %c0_0] : memref<256x512xf32, #tpu.memory_space<vmem>>, vector<256x512xf32>
    %c0_1 = arith.constant 0 : index
    %c0_2 = arith.constant 0 : index
    %1 = vector.load %arg4[%c0_1, %c0_2] : memref<512x256xf32, #tpu.memory_space<vmem>>, vector<512x256xf32>
    %cst = arith.constant dense<0.000000e+00> : vector<256x256xf32>
    %2 = tpu.matmul %0, %1, %cst {dimension_numbers = #tpu.dot_dimension_numbers<[1], [0], [0], [1], [0, 0, 1, 1], [], []>} : vector<256x512xf32>, vector<512x256xf32>, vector<256x256xf32> -> vector<256x256xf32>
    %c0_i32 = arith.constant 0 : i32
    %3 = arith.cmpi eq, %arg2, %c0_i32 : i32
    %4 = arith.extui %3 : i1 to i32
    %c0_i32_3 = arith.constant 0 : i32
    %5 = arith.cmpi ne, %4, %c0_i32_3 : i32
    scf.if %5 {
      %c0_6 = arith.constant 0 : index
      %c0_7 = arith.constant 0 : index
      %9 = vector.load %arg5[%c0_6, %c0_7] : memref<256x256xf32, #tpu.memory_space<vmem>>, vector<256x256xf32>
      tpu.vector_store %arg5[%c0_6, %c0_7], %2 {strides = array<i32>} : memref<256x256xf32, #tpu.memory_space<vmem>>, vector<256x256xf32>,
    } else {
    }
    %c0_i32_4 = arith.constant 0 : i32
    %6 = arith.cmpi ne, %arg2, %c0_i32_4 : i32
    %7 = arith.extui %6 : i1 to i32
    %c0_i32_5 = arith.constant 0 : i32
    %8 = arith.cmpi ne, %7, %c0_i32_5 : i32
    scf.if %8 {
      %c0_6 = arith.constant 0 : index
      %c0_7 = arith.constant 0 : index
      %9 = vector.load %arg5[%c0_6, %c0_7] : memref<256x256xf32, #tpu.memory_space<vmem>>, vector<256x256xf32>
      %10 = arith.addf %9, %2 : vector<256x256xf32>
      %c0_8 = arith.constant 0 : index
      %c0_9 = arith.constant 0 : index
      %11 = vector.load %arg5[%c0_8, %c0_9] : memref<256x256xf32, #tpu.memory_space<vmem>>, vector<256x256xf32>
      tpu.vector_store %arg5[%c0_8, %c0_9], %10 {strides = array<i32>} : memref<256x256xf32, #tpu.memory_space<vmem>>, vector<256x256xf32>,
    } else {
    }
    return
  }
  func.func @transform_0(%arg0: i32, %arg1: i32, %arg2: i32) -> (i32, i32) {
    %c0_i32 = arith.constant 0 : i32
    return %arg0, %arg2 : i32, i32
  }
  func.func @transform_1(%arg0: i32, %arg1: i32, %arg2: i32) -> (i32, i32) {
    %c0_i32 = arith.constant 0 : i32
    return %arg2, %arg1 : i32, i32
  }
  func.func @transform_2(%arg0: i32, %arg1: i32, %arg2: i32) -> (i32, i32) {
    %c0_i32 = arith.constant 0 : i32
    return %arg0, %arg1 : i32, i32
  }
}

</mosaic_0001>

<bundles_post_ra>
// kernel: tpu_custom_call.1
= control target key start
LH: loop header
LB: loop body
LE: loop exit
PB: predicated region body
PF: predicated region fallthrough
CT: control target
= control target key end

     0   :  { %7 = vsyncpa [#allocation3], 0  ;;  %s2556_s0 = inlined_call_operand.hbm [shape: f32[256,4096], index: 0, kind: input, shape index: {}]   ;;  %s2557_s1 = inlined_call_operand.hbm [shape: f32[4096,256], index: 1, kind: input, shape index: {}]   ;;  %s2558_s2 = inlined_call_operand.hbm [shape: f32[256,256], index: 2, kind: output, shape index: {}]  }
   0x1   :  { %9 = vsyncpa [#allocation3 + $0x1], 0 }
   0x2   :  { %10 = vsyncpa [#allocation6], 0 }
   0x3   :  { %12 = vsyncpa [#allocation6 + $0x1], 0 }
   0x4   :  { %13 = vsyncpa [#allocation4], 0  ;;  %s1836_s9 = smov 0   ;;  %s1838_s10 = smov 0  }
   0x5   :  { %s1840_s11 = smov 0   ;;  %s1842_s12 = smov 0  }
   0x6   :  { %s1844_s13 = smov 0   ;;  %s1846_s14 = smov 0  }
   0x7 LB: > { %s1377_s15 = sadd.s32 4294967295, %s1809_s14   ;;  %s31_s16 = sadd.s32 1, %s1805_s13  ;;  %s1809_s14 = sphi %s1846_s14, %s19_s14   ;;  %s1805_s13 = sphi %s1844_s13, %s2616_s13   ;;  %s1801_s12 = sphi %s1842_s12, %s2615_s12   ;;  %s1797_s11 = sphi %s1840_s11, %s2614_s11   ;;  %s1793_s10 = sphi %s1838_s10, %s2613_s10   ;;  %s1789_s9 = sphi %s1836_s9, %s2612_s9  }
   0x8   : > { %p32_p0 = scmp.ge.s32.totalorder %s31_s16, 8  ;;  %s47_s17 = sadd.s32 1, %s1797_s11 }
   0x9   : > { %p54_p1 = scmp.ne.s32.totalorder %s1797_s11, %s1793_s10  ;;  %p55_p2 = scmp.eq.s32.totalorder %s1809_s14, 0 }
   0xa   : > { %s2618_s16 = smov (%p32_p0, %s31_s16), 0  ;;  %p60_p4 = scmp.ne.s32.totalorder %s1793_s10, %s1789_s9 }
   0xb   : > { %p1872_p3 = por %p55_p2, %p54_p1  ;;  %s43_s19 = ssub.s32 %s1805_s13, %s2618_s16 }
   0xc   : > { %p61_p5 = scmp.eq.s32.totalorder %s1377_s15, 0  ;;  %p45_p6 = scmp.eq.s32.totalorder %s43_s19, 0 }
   0xd   : > { %p1606_p8 = scmp.lt.s32.totalorder %s1809_s14, 8  ;;  %s1890_s22 = sand.u32 1, %s1797_s11  }
   0xe   : > { %p1881_p7 = por %p61_p5, %p60_p4  ;;  %s1396_s23 = sshll.u32 %s1805_s13, 9 }
   0xf   : > { %s1887_s21 = scalar_select %p45_p6, %s1797_s11, %s47_s17  }
  0x10   : > { %s2564_s20 = scalar_select %p1881_p7, 1, 0 }
  0x11   : > { %s1380_s24 = sshll.u32 %s1890_s22, 10  ;;  %s1897_s27 = scalar_lea.hbm %s2556_s0, %s1396_s23 }
  0x12   : > { %s144_s28 = scalar_lea.vmem [#allocation2], %s1380_s24  ;;  %p1903_p9 = pnand %p1606_p8, %p1872_p3 }
  0x13   : > { %s154_s29 = sshll.u32 %s144_s28, 4  ;;  %s141_s3 = scalar_lea.sflag [#allocation3], %s1890_s22  ;;  %s1907_s29 = int_to_ptr.vmem [resolvable:$true] %s154_s29 }
  0x14   : > { %s1665_s4 = scalar_lea.hbm %s1897_s27, 16384  ;;  %p1667_p12 = pneg %p1903_p9 }
  0x15   : > { %p1666_p11 = scmp.ne.s32.totalorder %s1897_s27, %s1665_s4  ;;  %s1670_s7 = scalar_lea.hbm %s2556_s0, 131072 }
  0x16   : > { %p1671_p1 = scmp.lt.u32.totalorder %s1897_s27, %s2556_s0  ;;  %p1672_p2 = scmp.lt.u32.totalorder %s1670_s7, %s1665_s4 }
  0x17   : > { %p1668_p13 = pnand %p1667_p12, %p1666_p11  ;;  %p1674_p4 = scmp.lt.u32.totalorder %s1665_s4, %s1897_s27 }
  0x18   : > { %p1673_p3 = por %p1672_p2, %p1671_p1 }
  0x19   : > { %p1669_p0 = pneg %p1668_p13 }
  0x1a   : > { %p1675_p5 = por %p1674_p4, %p1673_p3 }
  0x1c   : > { %p1676_p6 = pnand %p1675_p5, %p1669_p0 }
  0x1e   : > { %1679 = shalt.err (!%p1676_p6)
}
  0x1f   : > { %s1680_s17 = scalar_lea.vmem %s1907_s29, 16384  ;;  %s1811_s18 = smov [#allocation2]  }
  0x20   : > { %p1681_p8 = scmp.ne.s32.totalorder %s1907_s29, %s1680_s17  ;;  %s1685_s19 = sshll.u32 %s1811_s18, 4  ;;  %s1686_s19 = int_to_ptr.vmem [resolvable:$false] %s1685_s19 }
  0x21   : > { %s1687_s23 = scalar_lea.vmem %s1686_s19, 32768  ;;  %p1688_p10 = scmp.lt.s32.totalorder %s1907_s29, %s1686_s19 }
  0x22   : > { %p1683_p11 = pnand %p1681_p8, %p1667_p12  ;;  %p1689_p1 = scmp.lt.s32.totalorder %s1687_s23, %s1680_s17 }
  0x24   : > { %p1684_p13 = pneg %p1683_p11  ;;  %p1690_p2 = por %p1689_p1, %p1688_p10 }
  0x26   : > { %p1691_p3 = pnand %p1690_p2, %p1684_p13 }
  0x28   : > { %1694 = shalt.err (!%p1691_p3)
}
  0x29   : > { %s1812_s25 = smov 4096   ;;  %s1813_s26 = smov 512  }
  0x2a   : > { %s1814_s28 = smov 32   ;;  %p186_p0 = scmp.lt.s32.totalorder %s1809_s14, 9 }
  0x2b   : > { %1602 = dma.hbm_to_vmem [thread:$0]  (!%p1903_p9), %s1897_s27, 16384, %s1907_s29, %s141_s3, %s1812_s25, %s1813_s26, %s1814_s28  }
  0x2c   : > { %s1398_s4 = sshll.u32 %s1805_s13, 14  ;;  %p2566_p10 = scmp.ge.s32.totalorder %s1809_s14, 1 }
  0x2d   : > { %s1949_s8 = scalar_lea.hbm %s2557_s1, %s1398_s4  ;;  %s168_s9 = scalar_lea.vmem [#allocation5], %s1380_s24 }
  0x2e   : > { %p1942_p4 = pnand %p2566_p10, %p186_p0  ;;  %s178_s17 = sshll.u32 %s168_s9, 4  ;;  %s1953_s17 = int_to_ptr.vmem [resolvable:$true] %s178_s17 }
  0x2f   : > { %s165_s27 = scalar_lea.sflag [#allocation6], %s1890_s22  ;;  %s1695_s29 = scalar_lea.hbm %s1949_s8, 16384 }
  0x30   : > { %p1696_p5 = scmp.ne.s32.totalorder %s1949_s8, %s1695_s29  ;;  %s1700_s19 = scalar_lea.hbm %s2557_s1, 131072 }
  0x31   : > { %p1701_p11 = scmp.lt.u32.totalorder %s1949_s8, %s2557_s1  ;;  %p1702_p13 = scmp.lt.u32.totalorder %s1700_s19, %s1695_s29 }
  0x32   : > { %p1698_p6 = pnand %p1696_p5, %p1667_p12  ;;  %p1704_p2 = scmp.lt.u32.totalorder %s1695_s29, %s1949_s8 }
  0x33   : > { %p1703_p1 = por %p1702_p13, %p1701_p11 }
  0x34   : > { %p1699_p8 = pneg %p1698_p6 }
  0x35   : > { %p1705_p3 = por %p1704_p2, %p1703_p1 }
  0x37   : > { %p1706_p0 = pnand %p1705_p3, %p1699_p8 }
  0x39   : > { %1709 = shalt.err (!%p1706_p0)
}
  0x3a   : > { %s1710_s24 = scalar_lea.vmem %s1953_s17, 16384  ;;  %s1815_s26 = smov [#allocation5]  }
  0x3b   : > { %p1711_p10 = scmp.ne.s32.totalorder %s1953_s17, %s1710_s24  ;;  %s1715_s28 = sshll.u32 %s1815_s26, 4  ;;  %s1716_s28 = int_to_ptr.vmem [resolvable:$false] %s1715_s28 }
  0x3c   : > { %s1717_s4 = scalar_lea.vmem %s1716_s28, 32768  ;;  %p1718_p7 = scmp.lt.s32.totalorder %s1953_s17, %s1716_s28 }
  0x3d   : > { %p1713_p5 = pnand %p1711_p10, %p1667_p12  ;;  %p1719_p11 = scmp.lt.s32.totalorder %s1717_s4, %s1710_s24 }
  0x3f   : > { %p1714_p6 = pneg %p1713_p5  ;;  %p1720_p13 = por %p1719_p11, %p1718_p7 }
  0x41   : > { %p1721_p1 = pnand %p1720_p13, %p1714_p6 }
  0x43   : > { %1724 = shalt.err (!%p1721_p1)
}
  0x44   : > { %s1816_s6 = smov 256   ;;  %s1817_s7 = smov 16  }
  0x45   : > { %1605 = dma.hbm_to_vmem [thread:$0]  (!%p1903_p9), %s1949_s8, 16384, %s1953_s17, %s165_s27, %s1816_s6, %s1816_s6, %s1817_s7  }
  0x46   : > { %190 = sbr.rel (%p1942_p4) target bundleno = 559 (0x22f), region = 28 }
  0x4d   : > { %s192_s9 = sand.u32 1, %s1793_s10   ;;  %p2568_p7 = scmp.ne.s32.totalorder %s2564_s20, 0 }
  0x4e   : > { %s1388_s29 = sshll.u32 %s192_s9, 10  ;;  %s193_s3 = scalar_lea.sflag [#allocation3], %s192_s9 }
  0x4f   : > { %s1984_s18 = scalar_lea.vmem [#allocation2], %s1388_s29 }
  0x50   : > { %1776 = dma.done.wait (%p2568_p7), %s193_s3, 16384  }
  0x51   : > { %1778 = vsyncadd (%p2568_p7), %s193_s3, 4294950912  ;;  %s202_s19 = scalar_lea.sflag [#allocation6], %s192_s9  ;;  %s1990_s30 = scalar_lea.vmem [#allocation5], %s1388_s29 }
  0x52   : > { %1780 = dma.done.wait (%p2568_p7), %s202_s19, 16384  }
  0x53   : > { %1782 = vsyncadd (%p2568_p7), %s202_s19, 4294950912  ;;  %v361_v0 = vld [vmem:[%s1990_s30 + $0x8] sm:$0xff]  ;;  %v363_v1 = vld [vmem:[%s1990_s30 + $0x18] sm:$0xff]  ;;  %p1390_p9 = scmp.ne.s32.totalorder %s1801_s12, 0 }
  0x54   : > { %v425_v2 = vld [vmem:[%s1990_s30 + $0x208] sm:$0xff]  ;;  %v1399_v3 = vpack.c.bf16 %v363_v1, %v361_v0  ;;  %v427_v4 = vld [vmem:[%s1990_s30 + $0x218] sm:$0xff]  ;;  %v360_v5 = vld [vmem:[%s1990_s30] sm:$0xff] }
  0x55   : > { %v362_v6 = vld [vmem:[%s1990_s30 + $0x10] sm:$0xff]  ;;  %v1463_v7 = vpack.c.bf16 %v427_v4, %v425_v2  ;;  %v424_v9 = vld [vmem:[%s1990_s30 + $0x200] sm:$0xff]  ;;  %v365_v11 = vld [vmem:[%s1990_s30 + $0x28] sm:$0xff] }
  0x56   : > { %v1401_v8 = vpack.c.bf16 %v362_v6, %v360_v5  ;;  %v426_v10 = vld [vmem:[%s1990_s30 + $0x210] sm:$0xff]  ;;  %1400 = vmatprep.subr.bf16.mxu1 %v1399_v3  ;;  %v367_v13 = vld [vmem:[%s1990_s30 + $0x38] sm:$0xff]  ;;  %v429_v14 = vld [vmem:[%s1990_s30 + $0x228] sm:$0xff] }
  0x57   : > { %v1465_v12 = vpack.c.bf16 %v426_v10, %v424_v9  ;;  %v431_v15 = vld [vmem:[%s1990_s30 + $0x238] sm:$0xff]  ;;  %1464 = vmatprep.subr.bf16.mxu0 %v1463_v7  ;;  %v1403_v16 = vpack.c.bf16 %v367_v13, %v365_v11  ;;  %v364_v18 = vld [vmem:[%s1990_s30 + $0x20] sm:$0xff]  ;;  %v366_v19 = vld [vmem:[%s1990_s30 + $0x30] sm:$0xff] }
  0x58   : > { %1402 = vmatpush1.bf16.msra.mxu1 %v1401_v8  ;;  %v1467_v17 = vpack.c.bf16 %v431_v15, %v429_v14  ;;  %v428_v20 = vld [vmem:[%s1990_s30 + $0x220] sm:$0xff]  ;;  %v1405_v21 = vpack.c.bf16 %v366_v19, %v364_v18  ;;  %v430_v22 = vld [vmem:[%s1990_s30 + $0x230] sm:$0xff]  ;;  %v369_v23 = vld [vmem:[%s1990_s30 + $0x48] sm:$0xff] }
  0x59   : > { %1466 = vmatpush1.bf16.msra.mxu0 %v1465_v12  ;;  %v371_v24 = vld [vmem:[%s1990_s30 + $0x58] sm:$0xff]  ;;  %1404 = vmatprep.subr.bf16.mxu1 %v1403_v16  ;;  %v1469_v25 = vpack.c.bf16 %v430_v22, %v428_v20  ;;  %v433_v27 = vld [vmem:[%s1990_s30 + $0x248] sm:$0xff]  ;;  %v368_v29 = vld [vmem:[%s1990_s30 + $0x40] sm:$0xff] }
  0x5a   : > { %1468 = vmatprep.subr.bf16.mxu0 %v1467_v17  ;;  %v1407_v26 = vpack.c.bf16 %v371_v24, %v369_v23  ;;  %v435_v28 = vld [vmem:[%s1990_s30 + $0x258] sm:$0xff]  ;;  %v370_v31 = vld [vmem:[%s1990_s30 + $0x50] sm:$0xff]  ;;  %v432_v32 = vld [vmem:[%s1990_s30 + $0x240] sm:$0xff] }
  0x5b   : > { %v1471_v30 = vpack.c.bf16 %v435_v28, %v433_v27  ;;  %v434_v33 = vld [vmem:[%s1990_s30 + $0x250] sm:$0xff]  ;;  %v1409_v34 = vpack.c.bf16 %v370_v31, %v368_v29  ;;  %v373_v35 = vld [vmem:[%s1990_s30 + $0x68] sm:$0xff]  ;;  %v375_v36 = vld [vmem:[%s1990_s30 + $0x78] sm:$0xff] }
  0x5c   : > { %1406 = vmatpush1.bf16.msra.mxu1 %v1405_v21  ;;  %v437_v37 = vld [vmem:[%s1990_s30 + $0x268] sm:$0xff]  ;;  %v1473_v38 = vpack.c.bf16 %v434_v33, %v432_v32  ;;  %v1411_v39 = vpack.c.bf16 %v375_v36, %v373_v35  ;;  %v439_v40 = vld [vmem:[%s1990_s30 + $0x278] sm:$0xff]  ;;  %v372_v41 = vld [vmem:[%s1990_s30 + $0x60] sm:$0xff] }
  0x5d   : > { %1470 = vmatpush1.bf16.msra.mxu0 %v1469_v25  ;;  %1408 = vmatprep.subr.bf16.mxu1 %v1407_v26  ;;  %v374_v42 = vld [vmem:[%s1990_s30 + $0x70] sm:$0xff]  ;;  %v1475_v43 = vpack.c.bf16 %v439_v40, %v437_v37  ;;  %v436_v44 = vld [vmem:[%s1990_s30 + $0x260] sm:$0xff]  ;;  %v377_v46 = vld [vmem:[%s1990_s30 + $0x88] sm:$0xff] }
  0x5e   : > { %1472 = vmatprep.subr.bf16.mxu0 %v1471_v30  ;;  %v438_v45 = vld [vmem:[%s1990_s30 + $0x270] sm:$0xff]  ;;  %v379_v47 = vld [vmem:[%s1990_s30 + $0x98] sm:$0xff]  ;;  %v441_v48 = vld [vmem:[%s1990_s30 + $0x288] sm:$0xff]  ;;  %v1413_v50 = vpack.c.bf16 %v374_v42, %v372_v41 }
  0x5f   : > { %v443_v49 = vld [vmem:[%s1990_s30 + $0x298] sm:$0xff]  ;;  %v1477_v51 = vpack.c.bf16 %v438_v45, %v436_v44  ;;  %v1415_v52 = vpack.c.bf16 %v379_v47, %v377_v46  ;;  %v376_v53 = vld [vmem:[%s1990_s30 + $0x80] sm:$0xff]  ;;  %v378_v54 = vld [vmem:[%s1990_s30 + $0x90] sm:$0xff] }
  0x60   : > { %1410 = vmatpush1.bf16.msra.mxu1 %v1409_v34  ;;  %v440_v55 = vld [vmem:[%s1990_s30 + $0x280] sm:$0xff]  ;;  %v1479_v56 = vpack.c.bf16 %v443_v49, %v441_v48  ;;  %v442_v57 = vld [vmem:[%s1990_s30 + $0x290] sm:$0xff]  ;;  %v381_v58 = vld [vmem:[%s1990_s30 + $0xa8] sm:$0xff]  ;;  %v1417_v62 = vpack.c.bf16 %v378_v54, %v376_v53 }
  0x61   : > { %1474 = vmatpush1.bf16.msra.mxu0 %v1473_v38  ;;  %1412 = vmatprep.subr.bf16.mxu1 %v1411_v39  ;;  %v383_v59 = vld [vmem:[%s1990_s30 + $0xb8] sm:$0xff]  ;;  %v445_v60 = vld [vmem:[%s1990_s30 + $0x2a8] sm:$0xff]  ;;  %v1481_v63 = vpack.c.bf16 %v442_v57, %v440_v55  ;;  %v380_v1 = vld [vmem:[%s1990_s30 + $0xa0] sm:$0xff] }
  0x62   : > { %1476 = vmatprep.subr.bf16.mxu0 %v1475_v43  ;;  %v447_v61 = vld [vmem:[%s1990_s30 + $0x2b8] sm:$0xff]  ;;  %v1419_v0 = vpack.c.bf16 %v383_v59, %v381_v58  ;;  %v382_v2 = vld [vmem:[%s1990_s30 + $0xb0] sm:$0xff]  ;;  %v444_v3 = vld [vmem:[%s1990_s30 + $0x2a0] sm:$0xff] }
  0x63   : > { %v1483_v4 = vpack.c.bf16 %v447_v61, %v445_v60  ;;  %v446_v5 = vld [vmem:[%s1990_s30 + $0x2b0] sm:$0xff]  ;;  %v385_v6 = vld [vmem:[%s1990_s30 + $0xc8] sm:$0xff]  ;;  %v387_v7 = vld [vmem:[%s1990_s30 + $0xd8] sm:$0xff]  ;;  %v1421_v10 = vpack.c.bf16 %v382_v2, %v380_v1 }
  0x64   : > { %1414 = vmatpush1.bf16.msra.mxu1 %v1413_v50  ;;  %v449_v8 = vld [vmem:[%s1990_s30 + $0x2c8] sm:$0xff]  ;;  %v451_v9 = vld [vmem:[%s1990_s30 + $0x2d8] sm:$0xff]  ;;  %v1485_v11 = vpack.c.bf16 %v446_v5, %v444_v3  ;;  %v1423_v12 = vpack.c.bf16 %v387_v7, %v385_v6  ;;  %v384_v13 = vld [vmem:[%s1990_s30 + $0xc0] sm:$0xff] }
  0x65   : > { %1478 = vmatpush1.bf16.msra.mxu0 %v1477_v51  ;;  %1416 = vmatprep.subr.bf16.mxu1 %v1415_v52  ;;  %v386_v14 = vld [vmem:[%s1990_s30 + $0xd0] sm:$0xff]  ;;  %v448_v15 = vld [vmem:[%s1990_s30 + $0x2c0] sm:$0xff]  ;;  %v1487_v16 = vpack.c.bf16 %v451_v9, %v449_v8  ;;  %v389_v18 = vld [vmem:[%s1990_s30 + $0xe8] sm:$0xff] }
  0x66   : > { %1480 = vmatprep.subr.bf16.mxu0 %v1479_v56  ;;  %v450_v17 = vld [vmem:[%s1990_s30 + $0x2d0] sm:$0xff]  ;;  %v391_v19 = vld [vmem:[%s1990_s30 + $0xf8] sm:$0xff]  ;;  %v453_v20 = vld [vmem:[%s1990_s30 + $0x2e8] sm:$0xff]  ;;  %v1425_v22 = vpack.c.bf16 %v386_v14, %v384_v13 }
  0x67   : > { %v455_v21 = vld [vmem:[%s1990_s30 + $0x2f8] sm:$0xff]  ;;  %v1489_v23 = vpack.c.bf16 %v450_v17, %v448_v15  ;;  %v1427_v24 = vpack.c.bf16 %v391_v19, %v389_v18  ;;  %v388_v25 = vld [vmem:[%s1990_s30 + $0xe0] sm:$0xff]  ;;  %v390_v26 = vld [vmem:[%s1990_s30 + $0xf0] sm:$0xff] }
  0x68   : > { %1418 = vmatpush1.bf16.msra.mxu1 %v1417_v62  ;;  %v452_v27 = vld [vmem:[%s1990_s30 + $0x2e0] sm:$0xff]  ;;  %v1491_v28 = vpack.c.bf16 %v455_v21, %v453_v20  ;;  %v454_v29 = vld [vmem:[%s1990_s30 + $0x2f0] sm:$0xff]  ;;  %v393_v30 = vld [vmem:[%s1990_s30 + $0x108] sm:$0xff]  ;;  %v1429_v34 = vpack.c.bf16 %v390_v26, %v388_v25 }
  0x69   : > { %1482 = vmatpush1.bf16.msra.mxu0 %v1481_v63  ;;  %1420 = vmatprep.subr.bf16.mxu1 %v1419_v0  ;;  %v395_v31 = vld [vmem:[%s1990_s30 + $0x118] sm:$0xff]  ;;  %v457_v32 = vld [vmem:[%s1990_s30 + $0x308] sm:$0xff]  ;;  %v1493_v35 = vpack.c.bf16 %v454_v29, %v452_v27  ;;  %v392_v37 = vld [vmem:[%s1990_s30 + $0x100] sm:$0xff] }
  0x6a   : > { %1484 = vmatprep.subr.bf16.mxu0 %v1483_v4  ;;  %v459_v33 = vld [vmem:[%s1990_s30 + $0x318] sm:$0xff]  ;;  %v1431_v36 = vpack.c.bf16 %v395_v31, %v393_v30  ;;  %v394_v38 = vld [vmem:[%s1990_s30 + $0x110] sm:$0xff]  ;;  %v456_v39 = vld [vmem:[%s1990_s30 + $0x300] sm:$0xff] }
  0x6b   : > { %v1495_v40 = vpack.c.bf16 %v459_v33, %v457_v32  ;;  %v458_v41 = vld [vmem:[%s1990_s30 + $0x310] sm:$0xff]  ;;  %v397_v42 = vld [vmem:[%s1990_s30 + $0x128] sm:$0xff]  ;;  %v399_v43 = vld [vmem:[%s1990_s30 + $0x138] sm:$0xff]  ;;  %v1433_v46 = vpack.c.bf16 %v394_v38, %v392_v37 }
  0x6c   : > { %1422 = vmatpush1.bf16.msra.mxu1 %v1421_v10  ;;  %v461_v44 = vld [vmem:[%s1990_s30 + $0x328] sm:$0xff]  ;;  %v463_v45 = vld [vmem:[%s1990_s30 + $0x338] sm:$0xff]  ;;  %v1497_v47 = vpack.c.bf16 %v458_v41, %v456_v39  ;;  %v1435_v48 = vpack.c.bf16 %v399_v43, %v397_v42  ;;  %v396_v49 = vld [vmem:[%s1990_s30 + $0x120] sm:$0xff] }
  0x6d   : > { %1486 = vmatpush1.bf16.msra.mxu0 %v1485_v11  ;;  %1424 = vmatprep.subr.bf16.mxu1 %v1423_v12  ;;  %v398_v50 = vld [vmem:[%s1990_s30 + $0x130] sm:$0xff]  ;;  %v460_v51 = vld [vmem:[%s1990_s30 + $0x320] sm:$0xff]  ;;  %v1499_v52 = vpack.c.bf16 %v463_v45, %v461_v44  ;;  %v401_v54 = vld [vmem:[%s1990_s30 + $0x148] sm:$0xff] }
  0x6e   : > { %1488 = vmatprep.subr.bf16.mxu0 %v1487_v16  ;;  %v462_v53 = vld [vmem:[%s1990_s30 + $0x330] sm:$0xff]  ;;  %v403_v55 = vld [vmem:[%s1990_s30 + $0x158] sm:$0xff]  ;;  %v465_v56 = vld [vmem:[%s1990_s30 + $0x348] sm:$0xff]  ;;  %v1437_v58 = vpack.c.bf16 %v398_v50, %v396_v49 }
  0x6f   : > { %v467_v57 = vld [vmem:[%s1990_s30 + $0x358] sm:$0xff]  ;;  %v1501_v59 = vpack.c.bf16 %v462_v53, %v460_v51  ;;  %v1439_v60 = vpack.c.bf16 %v403_v55, %v401_v54  ;;  %v400_v61 = vld [vmem:[%s1990_s30 + $0x140] sm:$0xff]  ;;  %v402_v62 = vld [vmem:[%s1990_s30 + $0x150] sm:$0xff] }
  0x70   : > { %1426 = vmatpush1.bf16.msra.mxu1 %v1425_v22  ;;  %v464_v63 = vld [vmem:[%s1990_s30 + $0x340] sm:$0xff]  ;;  %v1503_v0 = vpack.c.bf16 %v467_v57, %v465_v56  ;;  %v466_v1 = vld [vmem:[%s1990_s30 + $0x350] sm:$0xff]  ;;  %v405_v2 = vld [vmem:[%s1990_s30 + $0x168] sm:$0xff]  ;;  %v1441_v6 = vpack.c.bf16 %v402_v62, %v400_v61 }
  0x71   : > { %1490 = vmatpush1.bf16.msra.mxu0 %v1489_v23  ;;  %1428 = vmatprep.subr.bf16.mxu1 %v1427_v24  ;;  %v407_v3 = vld [vmem:[%s1990_s30 + $0x178] sm:$0xff]  ;;  %v469_v4 = vld [vmem:[%s1990_s30 + $0x368] sm:$0xff]  ;;  %v404_v7 = vld [vmem:[%s1990_s30 + $0x160] sm:$0xff]  ;;  %v1505_v8 = vpack.c.bf16 %v466_v1, %v464_v63 }
  0x72   : > { %1492 = vmatprep.subr.bf16.mxu0 %v1491_v28  ;;  %v471_v5 = vld [vmem:[%s1990_s30 + $0x378] sm:$0xff]  ;;  %v1443_v9 = vpack.c.bf16 %v407_v3, %v405_v2  ;;  %v406_v10 = vld [vmem:[%s1990_s30 + $0x170] sm:$0xff]  ;;  %v468_v11 = vld [vmem:[%s1990_s30 + $0x360] sm:$0xff] }
  0x73   : > { %v470_v12 = vld [vmem:[%s1990_s30 + $0x370] sm:$0xff]  ;;  %v1507_v13 = vpack.c.bf16 %v471_v5, %v469_v4  ;;  %v409_v14 = vld [vmem:[%s1990_s30 + $0x188] sm:$0xff]  ;;  %v411_v15 = vld [vmem:[%s1990_s30 + $0x198] sm:$0xff]  ;;  %v1445_v20 = vpack.c.bf16 %v406_v10, %v404_v7 }
  0x74   : > { %1430 = vmatpush1.bf16.msra.mxu1 %v1429_v34  ;;  %v233_v16 = vld [vmem:[%s1984_s18 + $0x8] sm:$0xff]  ;;  %v475_v18 = vld [vmem:[%s1990_s30 + $0x398] sm:$0xff]  ;;  %v1509_v21 = vpack.c.bf16 %v470_v12, %v468_v11  ;;  %v1447_v22 = vpack.c.bf16 %v411_v15, %v409_v14  ;;  %v408_v23 = vld [vmem:[%s1990_s30 + $0x180] sm:$0xff] }
  0x75   : > { %1494 = vmatpush1.bf16.msra.mxu0 %v1493_v35  ;;  %1432 = vmatprep.subr.bf16.mxu1 %v1431_v36  ;;  %v473_v17 = vld [vmem:[%s1990_s30 + $0x388] sm:$0xff]  ;;  %v235_v19 = vld [vmem:[%s1984_s18 + $0x18] sm:$0xff]  ;;  %v410_v24 = vld [vmem:[%s1990_s30 + $0x190] sm:$0xff] }
  0x76   : > { %1496 = vmatprep.subr.bf16.mxu0 %v1495_v40  ;;  %552 = vmatprep.mubr.f32.mxu1 %v233_v16  ;;  %v472_v25 = vld [vmem:[%s1990_s30 + $0x380] sm:$0xff]  ;;  %v1511_v26 = vpack.c.bf16 %v475_v18, %v473_v17  ;;  %v474_v27 = vld [vmem:[%s1990_s30 + $0x390] sm:$0xff]  ;;  %v413_v28 = vld [vmem:[%s1990_s30 + $0x1a8] sm:$0xff]  ;;  %v1449_v32 = vpack.c.bf16 %v410_v24, %v408_v23 }
  0x77   : > { %809 = vmatprep.mubr.f32.mxu0 %v235_v19  ;;  %v415_v29 = vld [vmem:[%s1990_s30 + $0x1b8] sm:$0xff]  ;;  %v477_v30 = vld [vmem:[%s1990_s30 + $0x3a8] sm:$0xff]  ;;  %v1513_v33 = vpack.c.bf16 %v474_v27, %v472_v25  ;;  %v412_v35 = vld [vmem:[%s1990_s30 + $0x1a0] sm:$0xff] }
  0x78   : > { %1434 = vmatpush1.bf16.msra.mxu1 %v1433_v46  ;;  %v479_v31 = vld [vmem:[%s1990_s30 + $0x3b8] sm:$0xff]  ;;  %v1451_v34 = vpack.c.bf16 %v415_v29, %v413_v28  ;;  %v414_v36 = vld [vmem:[%s1990_s30 + $0x1b0] sm:$0xff]  ;;  %v476_v37 = vld [vmem:[%s1990_s30 + $0x3a0] sm:$0xff] }
  0x79   : > { %1498 = vmatpush1.bf16.msra.mxu0 %v1497_v47  ;;  %1436 = vmatprep.subr.bf16.mxu1 %v1435_v48  ;;  %v1515_v38 = vpack.c.bf16 %v479_v31, %v477_v30  ;;  %v478_v39 = vld [vmem:[%s1990_s30 + $0x3b0] sm:$0xff]  ;;  %v417_v40 = vld [vmem:[%s1990_s30 + $0x1c8] sm:$0xff]  ;;  %v419_v41 = vld [vmem:[%s1990_s30 + $0x1d8] sm:$0xff]  ;;  %v1453_v44 = vpack.c.bf16 %v414_v36, %v412_v35 }
  0x7a   : > { %1500 = vmatprep.subr.bf16.mxu0 %v1499_v52  ;;  %v481_v42 = vld [vmem:[%s1990_s30 + $0x3c8] sm:$0xff]  ;;  %v483_v43 = vld [vmem:[%s1990_s30 + $0x3d8] sm:$0xff]  ;;  %v1517_v45 = vpack.c.bf16 %v478_v39, %v476_v37  ;;  %v1455_v46 = vpack.c.bf16 %v419_v41, %v417_v40  ;;  %v416_v47 = vld [vmem:[%s1990_s30 + $0x1c0] sm:$0xff] }
  0x7b   : > { %v418_v48 = vld [vmem:[%s1990_s30 + $0x1d0] sm:$0xff]  ;;  %v480_v49 = vld [vmem:[%s1990_s30 + $0x3c0] sm:$0xff]  ;;  %v1519_v50 = vpack.c.bf16 %v483_v43, %v481_v42  ;;  %v421_v52 = vld [vmem:[%s1990_s30 + $0x1e8] sm:$0xff] }
  0x7c   : > { %1438 = vmatpush1.bf16.msra.mxu1 %v1437_v58  ;;  %v482_v51 = vld [vmem:[%s1990_s30 + $0x3d0] sm:$0xff]  ;;  %v423_v53 = vld [vmem:[%s1990_s30 + $0x1f8] sm:$0xff]  ;;  %v485_v54 = vld [vmem:[%s1990_s30 + $0x3e8] sm:$0xff]  ;;  %v1457_v56 = vpack.c.bf16 %v418_v48, %v416_v47 }
  0x7d   : > { %1502 = vmatpush1.bf16.msra.mxu0 %v1501_v59  ;;  %1440 = vmatprep.subr.bf16.mxu1 %v1439_v60  ;;  %v487_v55 = vld [vmem:[%s1990_s30 + $0x3f8] sm:$0xff]  ;;  %v1521_v57 = vpack.c.bf16 %v482_v51, %v480_v49  ;;  %v1459_v58 = vpack.c.bf16 %v423_v53, %v421_v52  ;;  %v420_v59 = vld [vmem:[%s1990_s30 + $0x1e0] sm:$0xff]  ;;  %v422_v60 = vld [vmem:[%s1990_s30 + $0x1f0] sm:$0xff] }
  0x7e   : > { %1504 = vmatprep.subr.bf16.mxu0 %v1503_v0  ;;  %v1523_v61 = vpack.c.bf16 %v487_v55, %v485_v54  ;;  %v484_v62 = vld [vmem:[%s1990_s30 + $0x3e0] sm:$0xff]  ;;  %v486_v63 = vld [vmem:[%s1990_s30 + $0x3f0] sm:$0xff]  ;;  %v1461_v0 = vpack.c.bf16 %v422_v60, %v420_v59  ;;  %v237_v4 = vld [vmem:[%s1984_s18 + $0x28] sm:$0xff] }
  0x7f   : > { %v1525_v1 = vpack.c.bf16 %v486_v63, %v484_v62  ;;  %v232_v2 = vld [vmem:[%s1984_s18] sm:$0xff]  ;;  %v234_v3 = vld [vmem:[%s1984_s18 + $0x10] sm:$0xff]  ;;  %v239_v5 = vld [vmem:[%s1984_s18 + $0x38] sm:$0xff] }
  0x80   : > { %1442 = vmatpush1.bf16.msra.mxu1 %v1441_v6  ;;  %v236_v6 = vld [vmem:[%s1984_s18 + $0x20] sm:$0xff]  ;;  %v238_v7 = vld [vmem:[%s1984_s18 + $0x30] sm:$0xff]  ;;  %v245_v12 = vld [vmem:[%s1984_s18 + $0x68] sm:$0xff] }
  0x81   : > { %1506 = vmatpush1.bf16.msra.mxu0 %v1505_v8  ;;  %1444 = vmatprep.subr.bf16.mxu1 %v1443_v9  ;;  %v241_v8 = vld [vmem:[%s1984_s18 + $0x48] sm:$0xff]  ;;  %v243_v9 = vld [vmem:[%s1984_s18 + $0x58] sm:$0xff]  ;;  %v240_v10 = vld [vmem:[%s1984_s18 + $0x40] sm:$0xff] }
  0x82   : > { %1508 = vmatprep.subr.bf16.mxu0 %v1507_v13  ;;  %v242_v11 = vld [vmem:[%s1984_s18 + $0x50] sm:$0xff]  ;;  %v247_v13 = vld [vmem:[%s1984_s18 + $0x78] sm:$0xff]  ;;  %v244_v14 = vld [vmem:[%s1984_s18 + $0x60] sm:$0xff] }
  0x83   : > { %v246_v15 = vld [vmem:[%s1984_s18 + $0x70] sm:$0xff]  ;;  %v249_v16 = vld [vmem:[%s1984_s18 + $0x88] sm:$0xff]  ;;  %v251_v17 = vld [vmem:[%s1984_s18 + $0x98] sm:$0xff] }
  0x84   : > { %1446 = vmatpush1.bf16.msra.mxu1 %v1445_v20  ;;  %v248_v18 = vld [vmem:[%s1984_s18 + $0x80] sm:$0xff]  ;;  %v250_v19 = vld [vmem:[%s1984_s18 + $0x90] sm:$0xff]  ;;  %v253_v20 = vld [vmem:[%s1984_s18 + $0xa8] sm:$0xff] }
  0x85   : > { %1510 = vmatpush1.bf16.msra.mxu0 %v1509_v21  ;;  %1448 = vmatprep.subr.bf16.mxu1 %v1447_v22  ;;  %v255_v21 = vld [vmem:[%s1984_s18 + $0xb8] sm:$0xff]  ;;  %v252_v22 = vld [vmem:[%s1984_s18 + $0xa0] sm:$0xff]  ;;  %v254_v23 = vld [vmem:[%s1984_s18 + $0xb0] sm:$0xff] }
  0x86   : > { %1512 = vmatprep.subr.bf16.mxu0 %v1511_v26  ;;  %v257_v24 = vld [vmem:[%s1984_s18 + $0xc8] sm:$0xff]  ;;  %v259_v25 = vld [vmem:[%s1984_s18 + $0xd8] sm:$0xff]  ;;  %v256_v26 = vld [vmem:[%s1984_s18 + $0xc0] sm:$0xff] }
  0x87   : > { %v258_v27 = vld [vmem:[%s1984_s18 + $0xd0] sm:$0xff]  ;;  %v261_v28 = vld [vmem:[%s1984_s18 + $0xe8] sm:$0xff]  ;;  %v263_v29 = vld [vmem:[%s1984_s18 + $0xf8] sm:$0xff] }
  0x88   : > { %1450 = vmatpush1.bf16.msra.mxu1 %v1449_v32  ;;  %v260_v30 = vld [vmem:[%s1984_s18 + $0xe0] sm:$0xff]  ;;  %v262_v31 = vld [vmem:[%s1984_s18 + $0xf0] sm:$0xff]  ;;  %v265_v32 = vld [vmem:[%s1984_s18 + $0x108] sm:$0xff] }
  0x89   : > { %1514 = vmatpush1.bf16.msra.mxu0 %v1513_v33  ;;  %1452 = vmatprep.subr.bf16.mxu1 %v1451_v34  ;;  %v267_v33 = vld [vmem:[%s1984_s18 + $0x118] sm:$0xff]  ;;  %v264_v34 = vld [vmem:[%s1984_s18 + $0x100] sm:$0xff]  ;;  %v266_v35 = vld [vmem:[%s1984_s18 + $0x110] sm:$0xff] }
  0x8a   : > { %1516 = vmatprep.subr.bf16.mxu0 %v1515_v38  ;;  %v269_v36 = vld [vmem:[%s1984_s18 + $0x128] sm:$0xff]  ;;  %v271_v37 = vld [vmem:[%s1984_s18 + $0x138] sm:$0xff]  ;;  %v268_v38 = vld [vmem:[%s1984_s18 + $0x120] sm:$0xff] }
  0x8b   : > { %v270_v39 = vld [vmem:[%s1984_s18 + $0x130] sm:$0xff]  ;;  %v273_v40 = vld [vmem:[%s1984_s18 + $0x148] sm:$0xff]  ;;  %v275_v41 = vld [vmem:[%s1984_s18 + $0x158] sm:$0xff] }
  0x8c   : > { %1454 = vmatpush1.bf16.msra.mxu1 %v1453_v44  ;;  %v272_v42 = vld [vmem:[%s1984_s18 + $0x140] sm:$0xff]  ;;  %v274_v43 = vld [vmem:[%s1984_s18 + $0x150] sm:$0xff]  ;;  %v277_v44 = vld [vmem:[%s1984_s18 + $0x168] sm:$0xff] }
  0x8d   : > { %1518 = vmatpush1.bf16.msra.mxu0 %v1517_v45  ;;  %1456 = vmatprep.subr.bf16.mxu1 %v1455_v46  ;;  %v279_v45 = vld [vmem:[%s1984_s18 + $0x178] sm:$0xff]  ;;  %v276_v46 = vld [vmem:[%s1984_s18 + $0x160] sm:$0xff]  ;;  %v278_v47 = vld [vmem:[%s1984_s18 + $0x170] sm:$0xff] }
  0x8e   : > { %1520 = vmatprep.subr.bf16.mxu0 %v1519_v50  ;;  %v281_v48 = vld [vmem:[%s1984_s18 + $0x188] sm:$0xff]  ;;  %v283_v49 = vld [vmem:[%s1984_s18 + $0x198] sm:$0xff]  ;;  %v280_v50 = vld [vmem:[%s1984_s18 + $0x180] sm:$0xff] }
  0x8f   : > { %v282_v51 = vld [vmem:[%s1984_s18 + $0x190] sm:$0xff]  ;;  %v285_v52 = vld [vmem:[%s1984_s18 + $0x1a8] sm:$0xff]  ;;  %v287_v53 = vld [vmem:[%s1984_s18 + $0x1b8] sm:$0xff] }
  0x90   : > { %1458 = vmatpush1.bf16.msra.mxu1 %v1457_v56  ;;  %v284_v54 = vld [vmem:[%s1984_s18 + $0x1a0] sm:$0xff]  ;;  %v286_v55 = vld [vmem:[%s1984_s18 + $0x1b0] sm:$0xff]  ;;  %v289_v56 = vld [vmem:[%s1984_s18 + $0x1c8] sm:$0xff] }
  0x91   : > { %1522 = vmatpush1.bf16.msra.mxu0 %v1521_v57  ;;  %1460 = vmatprep.subr.bf16.mxu1 %v1459_v58  ;;  %v291_v57 = vld [vmem:[%s1984_s18 + $0x1d8] sm:$0xff]  ;;  %v288_v58 = vld [vmem:[%s1984_s18 + $0x1c0] sm:$0xff]  ;;  %v290_v59 = vld [vmem:[%s1984_s18 + $0x1d0] sm:$0xff] }
  0x92   : > { %1524 = vmatprep.subr.bf16.mxu0 %v1523_v61  ;;  %v293_v60 = vld [vmem:[%s1984_s18 + $0x1e8] sm:$0xff]  ;;  %v295_v61 = vld [vmem:[%s1984_s18 + $0x1f8] sm:$0xff]  ;;  %v292_v62 = vld [vmem:[%s1984_s18 + $0x1e0] sm:$0xff] }
  0x93   : > { %v294_v63 = vld [vmem:[%s1984_s18 + $0x1f0] sm:$0xff] }
  0x94   : > { %1462 = vmatpush1.bf16.msra.mxu1 %v1461_v0  ;;  %v297_v0 = vld [vmem:[%s1984_s18 + $0x208] sm:$0xff] }
  0x95   : > { %1526 = vmatpush1.bf16.msra.mxu0 %v1525_v1  ;;  %v299_v1 = vld [vmem:[%s1984_s18 + $0x218] sm:$0xff] }
  0x97   : > { %553 = vmatmul.mubr.f32.vlgmr.msra.gmra.mrb[0].mxu1 %v232_v2  ;;  %v296_v2 = vld [vmem:[%s1984_s18 + $0x200] sm:$0xff] }
  0x98   : > { %810 = vmatmul.mubr.f32.vlgmr.msra.gmra.mrb[0].mxu0 %v234_v3  ;;  %558 = vmatprep.mubr.f32.mxu1 %v237_v4  ;;  %v298_v3 = vld [vmem:[%s1984_s18 + $0x210] sm:$0xff]  ;;  %v301_v4 = vld [vmem:[%s1984_s18 + $0x228] sm:$0xff] }
  0x99   : > { %815 = vmatprep.mubr.f32.mxu0 %v239_v5  ;;  %v303_v5 = vld [vmem:[%s1984_s18 + $0x238] sm:$0xff] }
  0x9b   : > { %559 = vmatmul.mubr.f32.gmra.mrb[2].mxu1 %v236_v6  ;;  %v300_v6 = vld [vmem:[%s1984_s18 + $0x220] sm:$0xff] }
  0x9c   : > { %816 = vmatmul.mubr.f32.gmra.mrb[2].mxu0 %v238_v7  ;;  %564 = vmatprep.mubr.f32.mxu1 %v241_v8  ;;  %v302_v7 = vld [vmem:[%s1984_s18 + $0x230] sm:$0xff]  ;;  %v305_v8 = vld [vmem:[%s1984_s18 + $0x248] sm:$0xff] }
  0x9d   : > { %821 = vmatprep.mubr.f32.mxu0 %v243_v9  ;;  %v307_v9 = vld [vmem:[%s1984_s18 + $0x258] sm:$0xff] }
  0x9f   : > { %565 = vmatmul.mubr.f32.gmra.mrb[4].mxu1 %v240_v10  ;;  %v304_v10 = vld [vmem:[%s1984_s18 + $0x240] sm:$0xff] }
  0xa0   : > { %822 = vmatmul.mubr.f32.gmra.mrb[4].mxu0 %v242_v11  ;;  %570 = vmatprep.mubr.f32.mxu1 %v245_v12  ;;  %v306_v11 = vld [vmem:[%s1984_s18 + $0x250] sm:$0xff]  ;;  %v309_v12 = vld [vmem:[%s1984_s18 + $0x268] sm:$0xff] }
  0xa1   : > { %827 = vmatprep.mubr.f32.mxu0 %v247_v13  ;;  %v311_v13 = vld [vmem:[%s1984_s18 + $0x278] sm:$0xff] }
  0xa3   : > { %571 = vmatmul.mubr.f32.gmra.mrb[6].mxu1 %v244_v14  ;;  %v308_v14 = vld [vmem:[%s1984_s18 + $0x260] sm:$0xff] }
  0xa4   : > { %828 = vmatmul.mubr.f32.gmra.mrb[6].mxu0 %v246_v15  ;;  %576 = vmatprep.mubr.f32.mxu1 %v249_v16  ;;  %v310_v15 = vld [vmem:[%s1984_s18 + $0x270] sm:$0xff]  ;;  %v313_v16 = vld [vmem:[%s1984_s18 + $0x288] sm:$0xff] }
  0xa5   : > { %833 = vmatprep.mubr.f32.mxu0 %v251_v17  ;;  %v315_v17 = vld [vmem:[%s1984_s18 + $0x298] sm:$0xff] }
  0xa7   : > { %577 = vmatmul.mubr.f32.gmra.mrb[8].mxu1 %v248_v18  ;;  %v312_v18 = vld [vmem:[%s1984_s18 + $0x280] sm:$0xff] }
  0xa8   : > { %834 = vmatmul.mubr.f32.gmra.mrb[8].mxu0 %v250_v19  ;;  %582 = vmatprep.mubr.f32.mxu1 %v253_v20  ;;  %v314_v19 = vld [vmem:[%s1984_s18 + $0x290] sm:$0xff]  ;;  %v317_v20 = vld [vmem:[%s1984_s18 + $0x2a8] sm:$0xff] }
  0xa9   : > { %839 = vmatprep.mubr.f32.mxu0 %v255_v21  ;;  %v319_v21 = vld [vmem:[%s1984_s18 + $0x2b8] sm:$0xff] }
  0xab   : > { %583 = vmatmul.mubr.f32.gmra.mrb[10].mxu1 %v252_v22  ;;  %v316_v22 = vld [vmem:[%s1984_s18 + $0x2a0] sm:$0xff] }
  0xac   : > { %840 = vmatmul.mubr.f32.gmra.mrb[10].mxu0 %v254_v23  ;;  %588 = vmatprep.mubr.f32.mxu1 %v257_v24  ;;  %v318_v23 = vld [vmem:[%s1984_s18 + $0x2b0] sm:$0xff]  ;;  %v321_v24 = vld [vmem:[%s1984_s18 + $0x2c8] sm:$0xff] }
  0xad   : > { %845 = vmatprep.mubr.f32.mxu0 %v259_v25  ;;  %v323_v25 = vld [vmem:[%s1984_s18 + $0x2d8] sm:$0xff] }
  0xaf   : > { %589 = vmatmul.mubr.f32.gmra.mrb[12].mxu1 %v256_v26  ;;  %v320_v26 = vld [vmem:[%s1984_s18 + $0x2c0] sm:$0xff] }
  0xb0   : > { %846 = vmatmul.mubr.f32.gmra.mrb[12].mxu0 %v258_v27  ;;  %594 = vmatprep.mubr.f32.mxu1 %v261_v28  ;;  %v322_v27 = vld [vmem:[%s1984_s18 + $0x2d0] sm:$0xff]  ;;  %v325_v28 = vld [vmem:[%s1984_s18 + $0x2e8] sm:$0xff] }
  0xb1   : > { %851 = vmatprep.mubr.f32.mxu0 %v263_v29  ;;  %v327_v29 = vld [vmem:[%s1984_s18 + $0x2f8] sm:$0xff] }
  0xb3   : > { %595 = vmatmul.mubr.f32.gmra.mrb[14].mxu1 %v260_v30  ;;  %v324_v30 = vld [vmem:[%s1984_s18 + $0x2e0] sm:$0xff] }
  0xb4   : > { %852 = vmatmul.mubr.f32.gmra.mrb[14].mxu0 %v262_v31  ;;  %600 = vmatprep.mubr.f32.mxu1 %v265_v32  ;;  %v326_v31 = vld [vmem:[%s1984_s18 + $0x2f0] sm:$0xff]  ;;  %v329_v32 = vld [vmem:[%s1984_s18 + $0x308] sm:$0xff] }
  0xb5   : > { %857 = vmatprep.mubr.f32.mxu0 %v267_v33  ;;  %v331_v33 = vld [vmem:[%s1984_s18 + $0x318] sm:$0xff] }
  0xb7   : > { %601 = vmatmul.mubr.f32.gmra.mrb[16].mxu1 %v264_v34  ;;  %v328_v34 = vld [vmem:[%s1984_s18 + $0x300] sm:$0xff] }
  0xb8   : > { %858 = vmatmul.mubr.f32.gmra.mrb[16].mxu0 %v266_v35  ;;  %606 = vmatprep.mubr.f32.mxu1 %v269_v36  ;;  %v330_v35 = vld [vmem:[%s1984_s18 + $0x310] sm:$0xff]  ;;  %v333_v36 = vld [vmem:[%s1984_s18 + $0x328] sm:$0xff] }
  0xb9   : > { %863 = vmatprep.mubr.f32.mxu0 %v271_v37  ;;  %v335_v37 = vld [vmem:[%s1984_s18 + $0x338] sm:$0xff] }
  0xbb   : > { %607 = vmatmul.mubr.f32.gmra.mrb[18].mxu1 %v268_v38  ;;  %v332_v38 = vld [vmem:[%s1984_s18 + $0x320] sm:$0xff] }
  0xbc   : > { %864 = vmatmul.mubr.f32.gmra.mrb[18].mxu0 %v270_v39  ;;  %612 = vmatprep.mubr.f32.mxu1 %v273_v40  ;;  %v334_v39 = vld [vmem:[%s1984_s18 + $0x330] sm:$0xff]  ;;  %v337_v40 = vld [vmem:[%s1984_s18 + $0x348] sm:$0xff] }
  0xbd   : > { %869 = vmatprep.mubr.f32.mxu0 %v275_v41  ;;  %v339_v41 = vld [vmem:[%s1984_s18 + $0x358] sm:$0xff] }
  0xbf   : > { %613 = vmatmul.mubr.f32.gmra.mrb[20].mxu1 %v272_v42  ;;  %v336_v42 = vld [vmem:[%s1984_s18 + $0x340] sm:$0xff] }
  0xc0   : > { %870 = vmatmul.mubr.f32.gmra.mrb[20].mxu0 %v274_v43  ;;  %618 = vmatprep.mubr.f32.mxu1 %v277_v44  ;;  %v338_v43 = vld [vmem:[%s1984_s18 + $0x350] sm:$0xff]  ;;  %v341_v44 = vld [vmem:[%s1984_s18 + $0x368] sm:$0xff] }
  0xc1   : > { %875 = vmatprep.mubr.f32.mxu0 %v279_v45  ;;  %v343_v45 = vld [vmem:[%s1984_s18 + $0x378] sm:$0xff] }
  0xc3   : > { %619 = vmatmul.mubr.f32.gmra.mrb[22].mxu1 %v276_v46  ;;  %v340_v46 = vld [vmem:[%s1984_s18 + $0x360] sm:$0xff] }
  0xc4   : > { %876 = vmatmul.mubr.f32.gmra.mrb[22].mxu0 %v278_v47  ;;  %624 = vmatprep.mubr.f32.mxu1 %v281_v48  ;;  %v342_v47 = vld [vmem:[%s1984_s18 + $0x370] sm:$0xff]  ;;  %v345_v48 = vld [vmem:[%s1984_s18 + $0x388] sm:$0xff] }
  0xc5   : > { %881 = vmatprep.mubr.f32.mxu0 %v283_v49  ;;  %v347_v49 = vld [vmem:[%s1984_s18 + $0x398] sm:$0xff] }
  0xc7   : > { %625 = vmatmul.mubr.f32.gmra.mrb[24].mxu1 %v280_v50  ;;  %v344_v50 = vld [vmem:[%s1984_s18 + $0x380] sm:$0xff] }
  0xc8   : > { %882 = vmatmul.mubr.f32.gmra.mrb[24].mxu0 %v282_v51  ;;  %630 = vmatprep.mubr.f32.mxu1 %v285_v52  ;;  %v346_v51 = vld [vmem:[%s1984_s18 + $0x390] sm:$0xff]  ;;  %v349_v52 = vld [vmem:[%s1984_s18 + $0x3a8] sm:$0xff] }
  0xc9   : > { %887 = vmatprep.mubr.f32.mxu0 %v287_v53  ;;  %v351_v53 = vld [vmem:[%s1984_s18 + $0x3b8] sm:$0xff] }
  0xcb   : > { %631 = vmatmul.mubr.f32.gmra.mrb[26].mxu1 %v284_v54  ;;  %v348_v54 = vld [vmem:[%s1984_s18 + $0x3a0] sm:$0xff] }
  0xcc   : > { %888 = vmatmul.mubr.f32.gmra.mrb[26].mxu0 %v286_v55  ;;  %636 = vmatprep.mubr.f32.mxu1 %v289_v56  ;;  %v350_v55 = vld [vmem:[%s1984_s18 + $0x3b0] sm:$0xff]  ;;  %v353_v56 = vld [vmem:[%s1984_s18 + $0x3c8] sm:$0xff] }
  0xcd   : > { %893 = vmatprep.mubr.f32.mxu0 %v291_v57  ;;  %v355_v57 = vld [vmem:[%s1984_s18 + $0x3d8] sm:$0xff] }
  0xcf   : > { %637 = vmatmul.mubr.f32.gmra.mrb[28].mxu1 %v288_v58  ;;  %v352_v58 = vld [vmem:[%s1984_s18 + $0x3c0] sm:$0xff] }
  0xd0   : > { %894 = vmatmul.mubr.f32.gmra.mrb[28].mxu0 %v290_v59  ;;  %642 = vmatprep.mubr.f32.mxu1 %v293_v60  ;;  %v354_v59 = vld [vmem:[%s1984_s18 + $0x3d0] sm:$0xff]  ;;  %v357_v60 = vld [vmem:[%s1984_s18 + $0x3e8] sm:$0xff] }
  0xd1   : > { %899 = vmatprep.mubr.f32.mxu0 %v295_v61  ;;  %v359_v61 = vld [vmem:[%s1984_s18 + $0x3f8] sm:$0xff] }
  0xd3   : > { %643 = vmatmul.mubr.f32.gmra.mrb[30].mxu1 %v292_v62  ;;  %v356_v62 = vld [vmem:[%s1984_s18 + $0x3e0] sm:$0xff] }
  0xd4   : > { %900 = vmatmul.mubr.f32.gmra.mrb[30].mxu0 %v294_v63  ;;  %648 = vmatprep.mubr.f32.mxu1 %v297_v0  ;;  %v358_v63 = vld [vmem:[%s1984_s18 + $0x3f0] sm:$0xff] }
  0xd5   : > { %905 = vmatprep.mubr.f32.mxu0 %v299_v1 }
  0xd7   : > { %649 = vmatmul.mubr.f32.gmra.mrb[32].mxu1 %v296_v2 }
  0xd8   : > { %906 = vmatmul.mubr.f32.gmra.mrb[32].mxu0 %v298_v3  ;;  %654 = vmatprep.mubr.f32.mxu1 %v301_v4 }
  0xd9   : > { %911 = vmatprep.mubr.f32.mxu0 %v303_v5 }
  0xdb   : > { %655 = vmatmul.mubr.f32.gmra.mrb[34].mxu1 %v300_v6 }
  0xdc   : > { %912 = vmatmul.mubr.f32.gmra.mrb[34].mxu0 %v302_v7  ;;  %660 = vmatprep.mubr.f32.mxu1 %v305_v8 }
  0xdd   : > { %917 = vmatprep.mubr.f32.mxu0 %v307_v9 }
  0xdf   : > { %661 = vmatmul.mubr.f32.gmra.mrb[36].mxu1 %v304_v10 }
  0xe0   : > { %918 = vmatmul.mubr.f32.gmra.mrb[36].mxu0 %v306_v11  ;;  %666 = vmatprep.mubr.f32.mxu1 %v309_v12 }
  0xe1   : > { %923 = vmatprep.mubr.f32.mxu0 %v311_v13 }
  0xe3   : > { %667 = vmatmul.mubr.f32.gmra.mrb[38].mxu1 %v308_v14 }
  0xe4   : > { %924 = vmatmul.mubr.f32.gmra.mrb[38].mxu0 %v310_v15  ;;  %672 = vmatprep.mubr.f32.mxu1 %v313_v16 }
  0xe5   : > { %929 = vmatprep.mubr.f32.mxu0 %v315_v17 }
  0xe7   : > { %673 = vmatmul.mubr.f32.gmra.mrb[40].mxu1 %v312_v18 }
  0xe8   : > { %930 = vmatmul.mubr.f32.gmra.mrb[40].mxu0 %v314_v19  ;;  %678 = vmatprep.mubr.f32.mxu1 %v317_v20 }
  0xe9   : > { %935 = vmatprep.mubr.f32.mxu0 %v319_v21 }
  0xeb   : > { %679 = vmatmul.mubr.f32.gmra.mrb[42].mxu1 %v316_v22 }
  0xec   : > { %936 = vmatmul.mubr.f32.gmra.mrb[42].mxu0 %v318_v23  ;;  %684 = vmatprep.mubr.f32.mxu1 %v321_v24 }
  0xed   : > { %941 = vmatprep.mubr.f32.mxu0 %v323_v25 }
  0xef   : > { %685 = vmatmul.mubr.f32.gmra.mrb[44].mxu1 %v320_v26 }
  0xf0   : > { %942 = vmatmul.mubr.f32.gmra.mrb[44].mxu0 %v322_v27  ;;  %690 = vmatprep.mubr.f32.mxu1 %v325_v28 }
  0xf1   : > { %947 = vmatprep.mubr.f32.mxu0 %v327_v29 }
  0xf3   : > { %691 = vmatmul.mubr.f32.gmra.mrb[46].mxu1 %v324_v30 }
  0xf4   : > { %948 = vmatmul.mubr.f32.gmra.mrb[46].mxu0 %v326_v31  ;;  %696 = vmatprep.mubr.f32.mxu1 %v329_v32 }
  0xf5   : > { %953 = vmatprep.mubr.f32.mxu0 %v331_v33 }
  0xf7   : > { %697 = vmatmul.mubr.f32.gmra.mrb[48].mxu1 %v328_v34 }
  0xf8   : > { %954 = vmatmul.mubr.f32.gmra.mrb[48].mxu0 %v330_v35  ;;  %702 = vmatprep.mubr.f32.mxu1 %v333_v36 }
  0xf9   : > { %959 = vmatprep.mubr.f32.mxu0 %v335_v37 }
  0xfb   : > { %703 = vmatmul.mubr.f32.gmra.mrb[50].mxu1 %v332_v38 }
  0xfc   : > { %960 = vmatmul.mubr.f32.gmra.mrb[50].mxu0 %v334_v39  ;;  %708 = vmatprep.mubr.f32.mxu1 %v337_v40 }
  0xfd   : > { %965 = vmatprep.mubr.f32.mxu0 %v339_v41 }
  0xff   : > { %709 = vmatmul.mubr.f32.gmra.mrb[52].mxu1 %v336_v42 }
 0x100   : > { %966 = vmatmul.mubr.f32.gmra.mrb[52].mxu0 %v338_v43  ;;  %714 = vmatprep.mubr.f32.mxu1 %v341_v44 }
 0x101   : > { %971 = vmatprep.mubr.f32.mxu0 %v343_v45 }
 0x103   : > { %715 = vmatmul.mubr.f32.gmra.mrb[54].mxu1 %v340_v46 }
 0x104   : > { %972 = vmatmul.mubr.f32.gmra.mrb[54].mxu0 %v342_v47  ;;  %720 = vmatprep.mubr.f32.mxu1 %v345_v48 }
 0x105   : > { %977 = vmatprep.mubr.f32.mxu0 %v347_v49 }
 0x107   : > { %721 = vmatmul.mubr.f32.gmra.mrb[56].mxu1 %v344_v50 }
 0x108   : > { %978 = vmatmul.mubr.f32.gmra.mrb[56].mxu0 %v346_v51  ;;  %726 = vmatprep.mubr.f32.mxu1 %v349_v52 }
 0x109   : > { %983 = vmatprep.mubr.f32.mxu0 %v351_v53 }
 0x10b   : > { %727 = vmatmul.mubr.f32.gmra.mrb[58].mxu1 %v348_v54 }
 0x10c   : > { %984 = vmatmul.mubr.f32.gmra.mrb[58].mxu0 %v350_v55  ;;  %732 = vmatprep.mubr.f32.mxu1 %v353_v56 }
 0x10d   : > { %989 = vmatprep.mubr.f32.mxu0 %v355_v57 }
 0x10f   : > { %733 = vmatmul.mubr.f32.gmra.mrb[60].mxu1 %v352_v58 }
 0x110   : > { %990 = vmatmul.mubr.f32.gmra.mrb[60].mxu0 %v354_v59  ;;  %738 = vmatprep.mubr.f32.mxu1 %v357_v60 }
 0x111   : > { %995 = vmatprep.mubr.f32.mxu0 %v359_v61 }
 0x113   : > { %739 = vmatmul.mubr.f32.gmra.mrb[62].mxu1 %v356_v62 }
 0x114   : > { %996 = vmatmul.mubr.f32.gmra.mrb[62].mxu0 %v358_v63 }
 0x16a   : > { %v554_v0 = vpop.f32.mrb[0].mxu1 }
 0x16b   : > { %v811_v1 = vpop.f32.mrb[0].mxu0  ;;  %v556_v2 = vpop.f32.mrb[1].mxu1 }
 0x16c   : > { %v2252_v3 = vadd.f32 %v811_v1, %v554_v0  ;;  %v813_v4 = vpop.f32.mrb[1].mxu0 }
 0x16d   : > { %v2254_v5 = vadd.f32 %v813_v4, %v556_v2 }
 0x16e   : > { %v560_v6 = vpop.f32.mrb[2].mxu1  ;;  %1006 = vst [vmem:[#allocation7] sm:$0xff] (!%p1390_p9), %v2252_v3 }
 0x16f   : > { %v817_v7 = vpop.f32.mrb[2].mxu0  ;;  %v562_v8 = vpop.f32.mrb[3].mxu1  ;;  %1007 = vst [vmem:[#allocation7 + $0x8] sm:$0xff] (!%p1390_p9), %v2254_v5 }
 0x170   : > { %v2256_v9 = vadd.f32 %v817_v7, %v560_v6  ;;  %v819_v10 = vpop.f32.mrb[3].mxu0 }
 0x171   : > { %v2258_v11 = vadd.f32 %v819_v10, %v562_v8 }
 0x172   : > { %v566_v12 = vpop.f32.mrb[4].mxu1  ;;  %1008 = vst [vmem:[#allocation7 + $0x10] sm:$0xff] (!%p1390_p9), %v2256_v9 }
 0x173   : > { %v823_v13 = vpop.f32.mrb[4].mxu0  ;;  %v568_v14 = vpop.f32.mrb[5].mxu1  ;;  %1009 = vst [vmem:[#allocation7 + $0x18] sm:$0xff] (!%p1390_p9), %v2258_v11 }
 0x174   : > { %v2260_v15 = vadd.f32 %v823_v13, %v566_v12  ;;  %v825_v16 = vpop.f32.mrb[5].mxu0 }
 0x175   : > { %v2262_v17 = vadd.f32 %v825_v16, %v568_v14 }
 0x176   : > { %v572_v18 = vpop.f32.mrb[6].mxu1  ;;  %1010 = vst [vmem:[#allocation7 + $0x20] sm:$0xff] (!%p1390_p9), %v2260_v15 }
 0x177   : > { %v829_v19 = vpop.f32.mrb[6].mxu0  ;;  %v574_v20 = vpop.f32.mrb[7].mxu1  ;;  %1011 = vst [vmem:[#allocation7 + $0x28] sm:$0xff] (!%p1390_p9), %v2262_v17 }
 0x178   : > { %v2264_v21 = vadd.f32 %v829_v19, %v572_v18  ;;  %v831_v22 = vpop.f32.mrb[7].mxu0 }
 0x179   : > { %v2266_v23 = vadd.f32 %v831_v22, %v574_v20 }
 0x17a   : > { %v578_v24 = vpop.f32.mrb[8].mxu1  ;;  %1012 = vst [vmem:[#allocation7 + $0x30] sm:$0xff] (!%p1390_p9), %v2264_v21 }
 0x17b   : > { %v835_v25 = vpop.f32.mrb[8].mxu0  ;;  %v580_v26 = vpop.f32.mrb[9].mxu1  ;;  %1013 = vst [vmem:[#allocation7 + $0x38] sm:$0xff] (!%p1390_p9), %v2266_v23 }
 0x17c   : > { %v2268_v27 = vadd.f32 %v835_v25, %v578_v24  ;;  %v837_v28 = vpop.f32.mrb[9].mxu0 }
 0x17d   : > { %v2270_v29 = vadd.f32 %v837_v28, %v580_v26 }
 0x17e   : > { %v584_v30 = vpop.f32.mrb[10].mxu1  ;;  %1014 = vst [vmem:[#allocation7 + $0x40] sm:$0xff] (!%p1390_p9), %v2268_v27 }
 0x17f   : > { %v841_v31 = vpop.f32.mrb[10].mxu0  ;;  %v586_v32 = vpop.f32.mrb[11].mxu1  ;;  %1015 = vst [vmem:[#allocation7 + $0x48] sm:$0xff] (!%p1390_p9), %v2270_v29 }
 0x180   : > { %v2272_v33 = vadd.f32 %v841_v31, %v584_v30  ;;  %v843_v34 = vpop.f32.mrb[11].mxu0 }
 0x181   : > { %v2274_v35 = vadd.f32 %v843_v34, %v586_v32 }
 0x182   : > { %v590_v36 = vpop.f32.mrb[12].mxu1  ;;  %1016 = vst [vmem:[#allocation7 + $0x50] sm:$0xff] (!%p1390_p9), %v2272_v33 }
 0x183   : > { %v847_v37 = vpop.f32.mrb[12].mxu0  ;;  %v592_v38 = vpop.f32.mrb[13].mxu1  ;;  %1017 = vst [vmem:[#allocation7 + $0x58] sm:$0xff] (!%p1390_p9), %v2274_v35 }
 0x184   : > { %v2276_v39 = vadd.f32 %v847_v37, %v590_v36  ;;  %v849_v40 = vpop.f32.mrb[13].mxu0 }
 0x185   : > { %v2278_v41 = vadd.f32 %v849_v40, %v592_v38 }
 0x186   : > { %v596_v42 = vpop.f32.mrb[14].mxu1  ;;  %1018 = vst [vmem:[#allocation7 + $0x60] sm:$0xff] (!%p1390_p9), %v2276_v39 }
 0x187   : > { %v853_v43 = vpop.f32.mrb[14].mxu0  ;;  %v598_v44 = vpop.f32.mrb[15].mxu1  ;;  %1019 = vst [vmem:[#allocation7 + $0x68] sm:$0xff] (!%p1390_p9), %v2278_v41 }
 0x188   : > { %v2280_v45 = vadd.f32 %v853_v43, %v596_v42  ;;  %v855_v46 = vpop.f32.mrb[15].mxu0 }
 0x189   : > { %v2282_v47 = vadd.f32 %v855_v46, %v598_v44 }
 0x18a   : > { %v602_v48 = vpop.f32.mrb[16].mxu1  ;;  %1020 = vst [vmem:[#allocation7 + $0x70] sm:$0xff] (!%p1390_p9), %v2280_v45 }
 0x18b   : > { %v859_v49 = vpop.f32.mrb[16].mxu0  ;;  %v604_v50 = vpop.f32.mrb[17].mxu1  ;;  %1021 = vst [vmem:[#allocation7 + $0x78] sm:$0xff] (!%p1390_p9), %v2282_v47 }
 0x18c   : > { %v2284_v51 = vadd.f32 %v859_v49, %v602_v48  ;;  %v861_v52 = vpop.f32.mrb[17].mxu0 }
 0x18d   : > { %v2286_v53 = vadd.f32 %v861_v52, %v604_v50 }
 0x18e   : > { %v608_v54 = vpop.f32.mrb[18].mxu1  ;;  %1022 = vst [vmem:[#allocation7 + $0x80] sm:$0xff] (!%p1390_p9), %v2284_v51 }
 0x18f   : > { %v865_v55 = vpop.f32.mrb[18].mxu0  ;;  %v610_v56 = vpop.f32.mrb[19].mxu1  ;;  %1023 = vst [vmem:[#allocation7 + $0x88] sm:$0xff] (!%p1390_p9), %v2286_v53 }
 0x190   : > { %v2288_v57 = vadd.f32 %v865_v55, %v608_v54  ;;  %v867_v58 = vpop.f32.mrb[19].mxu0 }
 0x191   : > { %v2290_v59 = vadd.f32 %v867_v58, %v610_v56 }
 0x192   : > { %v614_v60 = vpop.f32.mrb[20].mxu1  ;;  %1024 = vst [vmem:[#allocation7 + $0x90] sm:$0xff] (!%p1390_p9), %v2288_v57 }
 0x193   : > { %v871_v61 = vpop.f32.mrb[20].mxu0  ;;  %v616_v62 = vpop.f32.mrb[21].mxu1  ;;  %1025 = vst [vmem:[#allocation7 + $0x98] sm:$0xff] (!%p1390_p9), %v2290_v59 }
 0x194   : > { %v2292_v63 = vadd.f32 %v871_v61, %v614_v60  ;;  %v873_v0 = vpop.f32.mrb[21].mxu0 }
 0x195   : > { %v2294_v1 = vadd.f32 %v873_v0, %v616_v62 }
 0x196   : > { %v620_v2 = vpop.f32.mrb[22].mxu1  ;;  %1026 = vst [vmem:[#allocation7 + $0xa0] sm:$0xff] (!%p1390_p9), %v2292_v63 }
 0x197   : > { %v877_v4 = vpop.f32.mrb[22].mxu0  ;;  %v622_v6 = vpop.f32.mrb[23].mxu1  ;;  %1027 = vst [vmem:[#allocation7 + $0xa8] sm:$0xff] (!%p1390_p9), %v2294_v1 }
 0x198   : > { %v2296_v7 = vadd.f32 %v877_v4, %v620_v2  ;;  %v879_v8 = vpop.f32.mrb[23].mxu0 }
 0x199   : > { %v2298_v10 = vadd.f32 %v879_v8, %v622_v6 }
 0x19a   : > { %v626_v12 = vpop.f32.mrb[24].mxu1  ;;  %1028 = vst [vmem:[#allocation7 + $0xb0] sm:$0xff] (!%p1390_p9), %v2296_v7 }
 0x19b   : > { %v883_v13 = vpop.f32.mrb[24].mxu0  ;;  %v628_v14 = vpop.f32.mrb[25].mxu1  ;;  %1029 = vst [vmem:[#allocation7 + $0xb8] sm:$0xff] (!%p1390_p9), %v2298_v10 }
 0x19c   : > { %v2300_v16 = vadd.f32 %v883_v13, %v626_v12  ;;  %v885_v18 = vpop.f32.mrb[25].mxu0 }
 0x19d   : > { %v2302_v19 = vadd.f32 %v885_v18, %v628_v14 }
 0x19e   : > { %v632_v20 = vpop.f32.mrb[26].mxu1  ;;  %1030 = vst [vmem:[#allocation7 + $0xc0] sm:$0xff] (!%p1390_p9), %v2300_v16 }
 0x19f   : > { %v889_v22 = vpop.f32.mrb[26].mxu0  ;;  %v634_v24 = vpop.f32.mrb[27].mxu1  ;;  %1031 = vst [vmem:[#allocation7 + $0xc8] sm:$0xff] (!%p1390_p9), %v2302_v19 }
 0x1a0   : > { %v2304_v25 = vadd.f32 %v889_v22, %v632_v20  ;;  %v891_v26 = vpop.f32.mrb[27].mxu0 }
 0x1a1   : > { %v2306_v28 = vadd.f32 %v891_v26, %v634_v24 }
 0x1a2   : > { %v638_v30 = vpop.f32.mrb[28].mxu1  ;;  %1032 = vst [vmem:[#allocation7 + $0xd0] sm:$0xff] (!%p1390_p9), %v2304_v25 }
 0x1a3   : > { %v895_v31 = vpop.f32.mrb[28].mxu0  ;;  %v640_v32 = vpop.f32.mrb[29].mxu1  ;;  %1033 = vst [vmem:[#allocation7 + $0xd8] sm:$0xff] (!%p1390_p9), %v2306_v28 }
 0x1a4   : > { %v2308_v34 = vadd.f32 %v895_v31, %v638_v30  ;;  %v897_v36 = vpop.f32.mrb[29].mxu0 }
 0x1a5   : > { %v2310_v37 = vadd.f32 %v897_v36, %v640_v32 }
 0x1a6   : > { %v644_v38 = vpop.f32.mrb[30].mxu1  ;;  %1034 = vst [vmem:[#allocation7 + $0xe0] sm:$0xff] (!%p1390_p9), %v2308_v34 }
 0x1a7   : > { %v901_v40 = vpop.f32.mrb[30].mxu0  ;;  %v646_v42 = vpop.f32.mrb[31].mxu1  ;;  %1035 = vst [vmem:[#allocation7 + $0xe8] sm:$0xff] (!%p1390_p9), %v2310_v37 }
 0x1a8   : > { %v2312_v43 = vadd.f32 %v901_v40, %v644_v38  ;;  %v903_v44 = vpop.f32.mrb[31].mxu0 }
 0x1a9   : > { %v2314_v46 = vadd.f32 %v903_v44, %v646_v42 }
 0x1aa   : > { %v650_v48 = vpop.f32.mrb[32].mxu1  ;;  %1036 = vst [vmem:[#allocation7 + $0xf0] sm:$0xff] (!%p1390_p9), %v2312_v43 }
 0x1ab   : > { %v907_v49 = vpop.f32.mrb[32].mxu0  ;;  %v652_v50 = vpop.f32.mrb[33].mxu1  ;;  %1037 = vst [vmem:[#allocation7 + $0xf8] sm:$0xff] (!%p1390_p9), %v2314_v46 }
 0x1ac   : > { %v2316_v52 = vadd.f32 %v907_v49, %v650_v48  ;;  %v909_v54 = vpop.f32.mrb[33].mxu0 }
 0x1ad   : > { %v2318_v55 = vadd.f32 %v909_v54, %v652_v50 }
 0x1ae   : > { %v656_v56 = vpop.f32.mrb[34].mxu1  ;;  %1038 = vst [vmem:[#allocation7 + $0x100] sm:$0xff] (!%p1390_p9), %v2316_v52 }
 0x1af   : > { %v913_v58 = vpop.f32.mrb[34].mxu0  ;;  %v658_v60 = vpop.f32.mrb[35].mxu1  ;;  %1039 = vst [vmem:[#allocation7 + $0x108] sm:$0xff] (!%p1390_p9), %v2318_v55 }
 0x1b0   : > { %v2320_v61 = vadd.f32 %v913_v58, %v656_v56  ;;  %v915_v62 = vpop.f32.mrb[35].mxu0 }
 0x1b1   : > { %v2322_v0 = vadd.f32 %v915_v62, %v658_v60 }
 0x1b2   : > { %v662_v2 = vpop.f32.mrb[36].mxu1  ;;  %1040 = vst [vmem:[#allocation7 + $0x110] sm:$0xff] (!%p1390_p9), %v2320_v61 }
 0x1b3   : > { %v919_v4 = vpop.f32.mrb[36].mxu0  ;;  %v664_v6 = vpop.f32.mrb[37].mxu1  ;;  %1041 = vst [vmem:[#allocation7 + $0x118] sm:$0xff] (!%p1390_p9), %v2322_v0 }
 0x1b4   : > { %v2324_v8 = vadd.f32 %v919_v4, %v662_v2  ;;  %v921_v12 = vpop.f32.mrb[37].mxu0 }
 0x1b5   : > { %v2326_v13 = vadd.f32 %v921_v12, %v664_v6 }
 0x1b6   : > { %v668_v14 = vpop.f32.mrb[38].mxu1  ;;  %1042 = vst [vmem:[#allocation7 + $0x120] sm:$0xff] (!%p1390_p9), %v2324_v8 }
 0x1b7   : > { %v925_v18 = vpop.f32.mrb[38].mxu0  ;;  %v670_v20 = vpop.f32.mrb[39].mxu1  ;;  %1043 = vst [vmem:[#allocation7 + $0x128] sm:$0xff] (!%p1390_p9), %v2326_v13 }
 0x1b8   : > { %v2328_v22 = vadd.f32 %v925_v18, %v668_v14  ;;  %v927_v24 = vpop.f32.mrb[39].mxu0 }
 0x1b9   : > { %v2330_v26 = vadd.f32 %v927_v24, %v670_v20 }
 0x1ba   : > { %v674_v30 = vpop.f32.mrb[40].mxu1  ;;  %1044 = vst [vmem:[#allocation7 + $0x130] sm:$0xff] (!%p1390_p9), %v2328_v22 }
 0x1bb   : > { %v931_v31 = vpop.f32.mrb[40].mxu0  ;;  %v676_v32 = vpop.f32.mrb[41].mxu1  ;;  %1045 = vst [vmem:[#allocation7 + $0x138] sm:$0xff] (!%p1390_p9), %v2330_v26 }
 0x1bc   : > { %v2332_v36 = vadd.f32 %v931_v31, %v674_v30  ;;  %v933_v38 = vpop.f32.mrb[41].mxu0 }
 0x1bd   : > { %v2334_v40 = vadd.f32 %v933_v38, %v676_v32 }
 0x1be   : > { %v680_v42 = vpop.f32.mrb[42].mxu1  ;;  %1046 = vst [vmem:[#allocation7 + $0x140] sm:$0xff] (!%p1390_p9), %v2332_v36 }
 0x1bf   : > { %v937_v44 = vpop.f32.mrb[42].mxu0  ;;  %v682_v48 = vpop.f32.mrb[43].mxu1  ;;  %1047 = vst [vmem:[#allocation7 + $0x148] sm:$0xff] (!%p1390_p9), %v2334_v40 }
 0x1c0   : > { %v2336_v49 = vadd.f32 %v937_v44, %v680_v42  ;;  %v939_v50 = vpop.f32.mrb[43].mxu0 }
 0x1c1   : > { %v2338_v54 = vadd.f32 %v939_v50, %v682_v48 }
 0x1c2   : > { %v686_v56 = vpop.f32.mrb[44].mxu1  ;;  %1048 = vst [vmem:[#allocation7 + $0x150] sm:$0xff] (!%p1390_p9), %v2336_v49 }
 0x1c3   : > { %v943_v58 = vpop.f32.mrb[44].mxu0  ;;  %v688_v60 = vpop.f32.mrb[45].mxu1  ;;  %1049 = vst [vmem:[#allocation7 + $0x158] sm:$0xff] (!%p1390_p9), %v2338_v54 }
 0x1c4   : > { %v2340_v62 = vadd.f32 %v943_v58, %v686_v56  ;;  %v945_v2 = vpop.f32.mrb[45].mxu0 }
 0x1c5   : > { %v2342_v4 = vadd.f32 %v945_v2, %v688_v60 }
 0x1c6   : > { %v692_v6 = vpop.f32.mrb[46].mxu1  ;;  %1050 = vst [vmem:[#allocation7 + $0x160] sm:$0xff] (!%p1390_p9), %v2340_v62 }
 0x1c7   : > { %v949_v12 = vpop.f32.mrb[46].mxu0  ;;  %v694_v14 = vpop.f32.mrb[47].mxu1  ;;  %1051 = vst [vmem:[#allocation7 + $0x168] sm:$0xff] (!%p1390_p9), %v2342_v4 }
 0x1c8   : > { %v2344_v18 = vadd.f32 %v949_v12, %v692_v6  ;;  %v951_v20 = vpop.f32.mrb[47].mxu0 }
 0x1c9   : > { %v2346_v24 = vadd.f32 %v951_v20, %v694_v14 }
 0x1ca   : > { %2569 = vst [vmem:[#allocation11_spill] sm:$0xff] %v2344_v18  ;;  %v698_v30 = vpop.f32.mrb[48].mxu1 }
 0x1cb   : > { %2570 = vst [vmem:[#allocation12_spill] sm:$0xff] %v2346_v24  ;;  %v955_v31 = vpop.f32.mrb[48].mxu0  ;;  %v700_v32 = vpop.f32.mrb[49].mxu1 }
 0x1cc   : > { %v2348_v38 = vadd.f32 %v955_v31, %v698_v30  ;;  %v957_v42 = vpop.f32.mrb[49].mxu0 }
 0x1cd   : > { %v2350_v44 = vadd.f32 %v957_v42, %v700_v32 }
 0x1ce   : > { %2571 = vst [vmem:[#allocation13_spill] sm:$0xff] %v2348_v38  ;;  %v704_v48 = vpop.f32.mrb[50].mxu1 }
 0x1cf   : > { %2572 = vst [vmem:[#allocation14_spill] sm:$0xff] %v2350_v44  ;;  %v961_v50 = vpop.f32.mrb[50].mxu0  ;;  %v706_v56 = vpop.f32.mrb[51].mxu1 }
 0x1d0   : > { %v2352_v58 = vadd.f32 %v961_v50, %v704_v48  ;;  %v963_v60 = vpop.f32.mrb[51].mxu0 }
 0x1d1   : > { %v2354_v2 = vadd.f32 %v963_v60, %v706_v56 }
 0x1d2   : > { %2573 = vst [vmem:[#allocation15_spill] sm:$0xff] %v2352_v58  ;;  %v710_v6 = vpop.f32.mrb[52].mxu1 }
 0x1d3   : > { %2574 = vst [vmem:[#allocation16_spill] sm:$0xff] %v2354_v2  ;;  %v967_v12 = vpop.f32.mrb[52].mxu0  ;;  %v712_v14 = vpop.f32.mrb[53].mxu1 }
 0x1d4   : > { %v2356_v20 = vadd.f32 %v967_v12, %v710_v6  ;;  %v969_v24 = vpop.f32.mrb[53].mxu0 }
 0x1d5   : > { %v2358_v18 = vadd.f32 %v969_v24, %v712_v14 }
 0x1d6   : > { %2575 = vst [vmem:[#allocation17_spill] sm:$0xff] %v2356_v20  ;;  %v716_v30 = vpop.f32.mrb[54].mxu1 }
 0x1d7   : > { %2576 = vst [vmem:[#allocation18_spill] sm:$0xff] %v2358_v18  ;;  %v973_v31 = vpop.f32.mrb[54].mxu0  ;;  %v718_v32 = vpop.f32.mrb[55].mxu1 }
 0x1d8   : > { %v2360_v42 = vadd.f32 %v973_v31, %v716_v30  ;;  %v975_v44 = vpop.f32.mrb[55].mxu0 }
 0x1d9   : > { %v2362_v38 = vadd.f32 %v975_v44, %v718_v32 }
 0x1da   : > { %2577 = vst [vmem:[#allocation19_spill] sm:$0xff] %v2360_v42  ;;  %v722_v48 = vpop.f32.mrb[56].mxu1 }
 0x1db   : > { %2578 = vst [vmem:[#allocation20_spill] sm:$0xff] %v2362_v38  ;;  %v979_v50 = vpop.f32.mrb[56].mxu0  ;;  %v724_v56 = vpop.f32.mrb[57].mxu1 }
 0x1dc   : > { %v2364_v60 = vadd.f32 %v979_v50, %v722_v48  ;;  %v981_v2 = vpop.f32.mrb[57].mxu0 }
 0x1dd   : > { %v2366_v58 = vadd.f32 %v981_v2, %v724_v56 }
 0x1de   : > { %2579 = vst [vmem:[#allocation21_spill] sm:$0xff] %v2364_v60  ;;  %v728_v6 = vpop.f32.mrb[58].mxu1 }
 0x1df   : > { %2580 = vst [vmem:[#allocation22_spill] sm:$0xff] %v2366_v58  ;;  %v985_v12 = vpop.f32.mrb[58].mxu0  ;;  %v730_v24 = vpop.f32.mrb[59].mxu1 }
 0x1e0   : > { %v2368_v14 = vadd.f32 %v985_v12, %v728_v6  ;;  %v987_v18 = vpop.f32.mrb[59].mxu0  ;;  %v2587_v6 = vld [vmem:[#allocation14_spill] sm:$0xff] (!%p1390_p9)  ;;  %v2588_v12 = vld [vmem:[#allocation15_spill] sm:$0xff] (!%p1390_p9) }
 0x1e1   : > { %v2370_v20 = vadd.f32 %v987_v18, %v730_v24  ;;  %v2584_v18 = vld [vmem:[#allocation11_spill] sm:$0xff] (!%p1390_p9)  ;;  %1055 = vst [vmem:[#allocation7 + $0x188] sm:$0xff] (!%p1390_p9), %v2587_v6  ;;  %1056 = vst [vmem:[#allocation7 + $0x190] sm:$0xff] (!%p1390_p9), %v2588_v12  ;;  %v2589_v24 = vld [vmem:[#allocation16_spill] sm:$0xff] (!%p1390_p9) }
 0x1e2   : > { %v734_v30 = vpop.f32.mrb[60].mxu1  ;;  %1052 = vst [vmem:[#allocation7 + $0x170] sm:$0xff] (!%p1390_p9), %v2584_v18  ;;  %1057 = vst [vmem:[#allocation7 + $0x198] sm:$0xff] (!%p1390_p9), %v2589_v24 }
 0x1e3   : > { %v991_v31 = vpop.f32.mrb[60].mxu0  ;;  %v736_v44 = vpop.f32.mrb[61].mxu1  ;;  %1064 = vst [vmem:[#allocation7 + $0x1d0] sm:$0xff] (!%p1390_p9), %v2368_v14  ;;  %1065 = vst [vmem:[#allocation7 + $0x1d8] sm:$0xff] (!%p1390_p9), %v2370_v20 }
 0x1e4   : > { %v2372_v32 = vadd.f32 %v991_v31, %v734_v30  ;;  %v993_v38 = vpop.f32.mrb[61].mxu0  ;;  %v2590_v30 = vld [vmem:[#allocation17_spill] sm:$0xff] (!%p1390_p9)  ;;  %v2591_v31 = vld [vmem:[#allocation18_spill] sm:$0xff] (!%p1390_p9) }
 0x1e5   : > { %v2374_v42 = vadd.f32 %v993_v38, %v736_v44  ;;  %1005 = sbr.rel (%p1390_p9) target bundleno = 493 (0x1ed), region = 40  ;;  %v2585_v38 = vld [vmem:[#allocation12_spill] sm:$0xff] (!%p1390_p9)  ;;  %1058 = vst [vmem:[#allocation7 + $0x1a0] sm:$0xff] (!%p1390_p9), %v2590_v30  ;;  %1059 = vst [vmem:[#allocation7 + $0x1a8] sm:$0xff] (!%p1390_p9), %v2591_v31  ;;  %v2592_v44 = vld [vmem:[#allocation19_spill] sm:$0xff] (!%p1390_p9) }
 0x1e6   : > { %v740_v48 = vpop.f32.mrb[62].mxu1  ;;  %1053 = vst [vmem:[#allocation7 + $0x178] sm:$0xff] (!%p1390_p9), %v2585_v38  ;;  %1060 = vst [vmem:[#allocation7 + $0x1b0] sm:$0xff] (!%p1390_p9), %v2592_v44 }
 0x1e7   : > { %2581 = vst [vmem:[#allocation23_spill] sm:$0xff] %v2374_v42  ;;  %v997_v50 = vpop.f32.mrb[62].mxu0  ;;  %v742_v2 = vpop.f32.mrb[63].mxu1  ;;  %1066 = vst [vmem:[#allocation7 + $0x1e0] sm:$0xff] (!%p1390_p9), %v2372_v32 }
 0x1e8   : > { %v2376_v56 = vadd.f32 %v997_v50, %v740_v48  ;;  %v999_v58 = vpop.f32.mrb[63].mxu0  ;;  %v2593_v48 = vld [vmem:[#allocation20_spill] sm:$0xff] (!%p1390_p9)  ;;  %v2594_v50 = vld [vmem:[#allocation21_spill] sm:$0xff] (!%p1390_p9)  ;;  %1067 = vst [vmem:[#allocation7 + $0x1e8] sm:$0xff] (!%p1390_p9), %v2374_v42 }
 0x1e9   : > { %v2378_v60 = vadd.f32 %v999_v58, %v742_v2  ;;  %v2586_v58 = vld [vmem:[#allocation13_spill] sm:$0xff] (!%p1390_p9)  ;;  %1061 = vst [vmem:[#allocation7 + $0x1b8] sm:$0xff] (!%p1390_p9), %v2593_v48  ;;  %1062 = vst [vmem:[#allocation7 + $0x1c0] sm:$0xff] (!%p1390_p9), %v2594_v50  ;;  %v2595_v2 = vld [vmem:[#allocation22_spill] sm:$0xff] (!%p1390_p9) }
 0x1ea   : > { %2582 = vst [vmem:[#allocation24_spill] sm:$0xff] %v2376_v56  ;;  %1054 = vst [vmem:[#allocation7 + $0x180] sm:$0xff] (!%p1390_p9), %v2586_v58 }
 0x1eb   : > { %2583 = vst [vmem:[#allocation25_spill] sm:$0xff] %v2378_v60  ;;  %1063 = vst [vmem:[#allocation7 + $0x1c8] sm:$0xff] (!%p1390_p9), %v2595_v2 }
 0x1ec   : > { %1068 = vst [vmem:[#allocation7 + $0x1f0] sm:$0xff] %v2376_v56  ;;  %1069 = vst [vmem:[#allocation7 + $0x1f8] sm:$0xff] %v2378_v60 }
 0x1ed PF: > { %p1391_p12 = scmp.eq.s32.totalorder %s1801_s12, 0 }
 0x1ee   : > { %v1074_v18 = vld [vmem:[#allocation7] sm:$0xff] (!%p1391_p12)  ;;  %v1075_v38 = vld [vmem:[#allocation7 + $0x8] sm:$0xff] (!%p1391_p12)  ;;  %v1076_v58 = vld [vmem:[#allocation7 + $0x10] sm:$0xff] (!%p1391_p12) }
 0x1ef   : > { %1073 = sbr.rel (%p1391_p12) target bundleno = 533 (0x215), region = 44  ;;  %v1138_v6 = vadd.f32 (!%p1391_p12), %v1074_v18, %v2252_v3  ;;  %v1139_v12 = vadd.f32 (!%p1391_p12), %v1075_v38, %v2254_v5  ;;  %v1140_v24 = vadd.f32 (!%p1391_p12), %v1076_v58, %v2256_v9  ;;  %v1077_v30 = vld [vmem:[#allocation7 + $0x18] sm:$0xff] (!%p1391_p12)  ;;  %v1078_v31 = vld [vmem:[#allocation7 + $0x20] sm:$0xff] (!%p1391_p12)  ;;  %v1079_v44 = vld [vmem:[#allocation7 + $0x28] sm:$0xff] (!%p1391_p12) }
 0x1f0   : > { %v1141_v48 = vadd.f32 (!%p1391_p12), %v1077_v30, %v2258_v11  ;;  %v1142_v50 = vadd.f32 (!%p1391_p12), %v1078_v31, %v2260_v15  ;;  %v1143_v2 = vadd.f32 (!%p1391_p12), %v1079_v44, %v2262_v17  ;;  %v1080_v60 = vld [vmem:[#allocation7 + $0x30] sm:$0xff] (!%p1391_p12)  ;;  %v1081_v56 = vld [vmem:[#allocation7 + $0x38] sm:$0xff] (!%p1391_p12)  ;;  %v1082_v42 = vld [vmem:[#allocation7 + $0x40] sm:$0xff] (!%p1391_p12) }
 0x1f1   : > { %1202 = vst [vmem:[#allocation7] sm:$0xff] (!%p1391_p12), %v1138_v6  ;;  %1203 = vst [vmem:[#allocation7 + $0x8] sm:$0xff] (!%p1391_p12), %v1139_v12  ;;  %v1144_v3 = vadd.f32 (!%p1391_p12), %v1080_v60, %v2264_v21  ;;  %v1145_v5 = vadd.f32 (!%p1391_p12), %v1081_v56, %v2266_v23  ;;  %v1146_v9 = vadd.f32 (!%p1391_p12), %v1082_v42, %v2268_v27  ;;  %v1083_v18 = vld [vmem:[#allocation7 + $0x48] sm:$0xff] (!%p1391_p12)  ;;  %v1084_v38 = vld [vmem:[#allocation7 + $0x50] sm:$0xff] (!%p1391_p12) }
 0x1f2   : > { %1204 = vst [vmem:[#allocation7 + $0x10] sm:$0xff] (!%p1391_p12), %v1140_v24  ;;  %v1085_v58 = vld [vmem:[#allocation7 + $0x58] sm:$0xff] (!%p1391_p12)  ;;  %1205 = vst [vmem:[#allocation7 + $0x18] sm:$0xff] (!%p1391_p12), %v1141_v48  ;;  %v1147_v11 = vadd.f32 (!%p1391_p12), %v1083_v18, %v2270_v29  ;;  %v1148_v15 = vadd.f32 (!%p1391_p12), %v1084_v38, %v2272_v33  ;;  %v1086_v6 = vld [vmem:[#allocation7 + $0x60] sm:$0xff] (!%p1391_p12) }
 0x1f3   : > { %1206 = vst [vmem:[#allocation7 + $0x20] sm:$0xff] (!%p1391_p12), %v1142_v50  ;;  %1207 = vst [vmem:[#allocation7 + $0x28] sm:$0xff] (!%p1391_p12), %v1143_v2  ;;  %v1149_v17 = vadd.f32 (!%p1391_p12), %v1085_v58, %v2274_v35  ;;  %v1087_v12 = vld [vmem:[#allocation7 + $0x68] sm:$0xff] (!%p1391_p12)  ;;  %v1088_v24 = vld [vmem:[#allocation7 + $0x70] sm:$0xff] (!%p1391_p12)  ;;  %v1150_v21 = vadd.f32 (!%p1391_p12), %v1086_v6, %v2276_v39 }
 0x1f4   : > { %1208 = vst [vmem:[#allocation7 + $0x30] sm:$0xff] (!%p1391_p12), %v1144_v3  ;;  %1209 = vst [vmem:[#allocation7 + $0x38] sm:$0xff] (!%p1391_p12), %v1145_v5  ;;  %v1151_v23 = vadd.f32 (!%p1391_p12), %v1087_v12, %v2278_v41  ;;  %v1152_v27 = vadd.f32 (!%p1391_p12), %v1088_v24, %v2280_v45  ;;  %v1089_v42 = vld [vmem:[#allocation7 + $0x78] sm:$0xff] (!%p1391_p12)  ;;  %v1090_v60 = vld [vmem:[#allocation7 + $0x80] sm:$0xff] (!%p1391_p12) }
 0x1f5   : > { %1210 = vst [vmem:[#allocation7 + $0x40] sm:$0xff] (!%p1391_p12), %v1146_v9  ;;  %v1091_v56 = vld [vmem:[#allocation7 + $0x88] sm:$0xff] (!%p1391_p12)  ;;  %1211 = vst [vmem:[#allocation7 + $0x48] sm:$0xff] (!%p1391_p12), %v1147_v11  ;;  %v1153_v29 = vadd.f32 (!%p1391_p12), %v1089_v42, %v2282_v47  ;;  %v1154_v33 = vadd.f32 (!%p1391_p12), %v1090_v60, %v2284_v51  ;;  %v1092_v30 = vld [vmem:[#allocation7 + $0x90] sm:$0xff] (!%p1391_p12) }
 0x1f6   : > { %1212 = vst [vmem:[#allocation7 + $0x50] sm:$0xff] %v1148_v15  ;;  %1213 = vst [vmem:[#allocation7 + $0x58] sm:$0xff] %v1149_v17  ;;  %v1155_v35 = vadd.f32 %v1091_v56, %v2286_v53  ;;  %v1093_v31 = vld [vmem:[#allocation7 + $0x98] sm:$0xff]  ;;  %v1094_v44 = vld [vmem:[#allocation7 + $0xa0] sm:$0xff]  ;;  %v1156_v39 = vadd.f32 %v1092_v30, %v2288_v57 }
 0x1f7   : > { %1214 = vst [vmem:[#allocation7 + $0x60] sm:$0xff] %v1150_v21  ;;  %1215 = vst [vmem:[#allocation7 + $0x68] sm:$0xff] %v1151_v23  ;;  %v1157_v41 = vadd.f32 %v1093_v31, %v2290_v59  ;;  %v1158_v45 = vadd.f32 %v1094_v44, %v2292_v63  ;;  %v1095_v48 = vld [vmem:[#allocation7 + $0xa8] sm:$0xff]  ;;  %v1096_v50 = vld [vmem:[#allocation7 + $0xb0] sm:$0xff] }
 0x1f8   : > { %1216 = vst [vmem:[#allocation7 + $0x70] sm:$0xff] %v1152_v27  ;;  %v1097_v2 = vld [vmem:[#allocation7 + $0xb8] sm:$0xff]  ;;  %1217 = vst [vmem:[#allocation7 + $0x78] sm:$0xff] %v1153_v29  ;;  %v1159_v47 = vadd.f32 %v1095_v48, %v2294_v1  ;;  %v1160_v51 = vadd.f32 %v1096_v50, %v2296_v7  ;;  %v1098_v3 = vld [vmem:[#allocation7 + $0xc0] sm:$0xff] }
 0x1f9   : > { %1218 = vst [vmem:[#allocation7 + $0x80] sm:$0xff] %v1154_v33  ;;  %1219 = vst [vmem:[#allocation7 + $0x88] sm:$0xff] %v1155_v35  ;;  %v1161_v53 = vadd.f32 %v1097_v2, %v2298_v10  ;;  %v1099_v5 = vld [vmem:[#allocation7 + $0xc8] sm:$0xff]  ;;  %v1100_v9 = vld [vmem:[#allocation7 + $0xd0] sm:$0xff]  ;;  %v1162_v57 = vadd.f32 %v1098_v3, %v2300_v16 }
 0x1fa   : > { %1220 = vst [vmem:[#allocation7 + $0x90] sm:$0xff] %v1156_v39  ;;  %1221 = vst [vmem:[#allocation7 + $0x98] sm:$0xff] %v1157_v41  ;;  %v1163_v59 = vadd.f32 %v1099_v5, %v2302_v19  ;;  %v1164_v63 = vadd.f32 %v1100_v9, %v2304_v25  ;;  %v1101_v18 = vld [vmem:[#allocation7 + $0xd8] sm:$0xff]  ;;  %v1102_v38 = vld [vmem:[#allocation7 + $0xe0] sm:$0xff] }
 0x1fb   : > { %1222 = vst [vmem:[#allocation7 + $0xa0] sm:$0xff] %v1158_v45  ;;  %v1103_v58 = vld [vmem:[#allocation7 + $0xe8] sm:$0xff]  ;;  %1223 = vst [vmem:[#allocation7 + $0xa8] sm:$0xff] %v1159_v47  ;;  %v1165_v1 = vadd.f32 %v1101_v18, %v2306_v28  ;;  %v1166_v7 = vadd.f32 %v1102_v38, %v2308_v34  ;;  %v1104_v11 = vld [vmem:[#allocation7 + $0xf0] sm:$0xff] }
 0x1fc   : > { %1224 = vst [vmem:[#allocation7 + $0xb0] sm:$0xff] %v1160_v51  ;;  %1225 = vst [vmem:[#allocation7 + $0xb8] sm:$0xff] %v1161_v53  ;;  %v1167_v10 = vadd.f32 %v1103_v58, %v2310_v37  ;;  %v1105_v15 = vld [vmem:[#allocation7 + $0xf8] sm:$0xff]  ;;  %v1106_v17 = vld [vmem:[#allocation7 + $0x100] sm:$0xff]  ;;  %v1168_v16 = vadd.f32 %v1104_v11, %v2312_v43 }
 0x1fd   : > { %1226 = vst [vmem:[#allocation7 + $0xc0] sm:$0xff] %v1162_v57  ;;  %1227 = vst [vmem:[#allocation7 + $0xc8] sm:$0xff] %v1163_v59  ;;  %v1169_v19 = vadd.f32 %v1105_v15, %v2314_v46  ;;  %v1170_v25 = vadd.f32 %v1106_v17, %v2316_v52  ;;  %v1107_v6 = vld [vmem:[#allocation7 + $0x108] sm:$0xff]  ;;  %v1108_v12 = vld [vmem:[#allocation7 + $0x110] sm:$0xff] }
 0x1fe   : > { %1228 = vst [vmem:[#allocation7 + $0xd0] sm:$0xff] %v1164_v63  ;;  %v1109_v24 = vld [vmem:[#allocation7 + $0x118] sm:$0xff]  ;;  %1229 = vst [vmem:[#allocation7 + $0xd8] sm:$0xff] %v1165_v1  ;;  %v1171_v28 = vadd.f32 %v1107_v6, %v2318_v55  ;;  %v1172_v34 = vadd.f32 %v1108_v12, %v2320_v61  ;;  %v1110_v21 = vld [vmem:[#allocation7 + $0x120] sm:$0xff] }
 0x1ff   : > { %1230 = vst [vmem:[#allocation7 + $0xe0] sm:$0xff] %v1166_v7  ;;  %1231 = vst [vmem:[#allocation7 + $0xe8] sm:$0xff] %v1167_v10  ;;  %v1173_v37 = vadd.f32 %v1109_v24, %v2322_v0  ;;  %v1111_v23 = vld [vmem:[#allocation7 + $0x128] sm:$0xff]  ;;  %v1112_v27 = vld [vmem:[#allocation7 + $0x130] sm:$0xff]  ;;  %v1174_v43 = vadd.f32 %v1110_v21, %v2324_v8 }
 0x200   : > { %1232 = vst [vmem:[#allocation7 + $0xf0] sm:$0xff] %v1168_v16  ;;  %1233 = vst [vmem:[#allocation7 + $0xf8] sm:$0xff] %v1169_v19  ;;  %v1175_v46 = vadd.f32 %v1111_v23, %v2326_v13  ;;  %v1176_v52 = vadd.f32 %v1112_v27, %v2328_v22  ;;  %v1113_v42 = vld [vmem:[#allocation7 + $0x138] sm:$0xff]  ;;  %v1114_v60 = vld [vmem:[#allocation7 + $0x140] sm:$0xff] }
 0x201   : > { %1234 = vst [vmem:[#allocation7 + $0x100] sm:$0xff] %v1170_v25  ;;  %v1115_v56 = vld [vmem:[#allocation7 + $0x148] sm:$0xff]  ;;  %1235 = vst [vmem:[#allocation7 + $0x108] sm:$0xff] %v1171_v28  ;;  %v1177_v55 = vadd.f32 %v1113_v42, %v2330_v26  ;;  %v1178_v61 = vadd.f32 %v1114_v60, %v2332_v36  ;;  %v1116_v29 = vld [vmem:[#allocation7 + $0x150] sm:$0xff] }
 0x202   : > { %1236 = vst [vmem:[#allocation7 + $0x110] sm:$0xff] %v1172_v34  ;;  %1237 = vst [vmem:[#allocation7 + $0x118] sm:$0xff] %v1173_v37  ;;  %v1179_v0 = vadd.f32 %v1115_v56, %v2334_v40  ;;  %v1117_v33 = vld [vmem:[#allocation7 + $0x158] sm:$0xff]  ;;  %v1118_v35 = vld [vmem:[#allocation7 + $0x160] sm:$0xff]  ;;  %v1180_v8 = vadd.f32 %v1116_v29, %v2336_v49 }
 0x203   : > { %1238 = vst [vmem:[#allocation7 + $0x120] sm:$0xff] %v1174_v43  ;;  %1239 = vst [vmem:[#allocation7 + $0x128] sm:$0xff] %v1175_v46  ;;  %v1181_v13 = vadd.f32 %v1117_v33, %v2338_v54  ;;  %v1182_v22 = vadd.f32 %v1118_v35, %v2340_v62  ;;  %v1119_v30 = vld [vmem:[#allocation7 + $0x168] sm:$0xff]  ;;  %v1120_v31 = vld [vmem:[#allocation7 + $0x170] sm:$0xff] }
 0x204   : > { %1240 = vst [vmem:[#allocation7 + $0x130] sm:$0xff] %v1176_v52  ;;  %v1121_v44 = vld [vmem:[#allocation7 + $0x178] sm:$0xff]  ;;  %1241 = vst [vmem:[#allocation7 + $0x138] sm:$0xff] %v1177_v55  ;;  %v1183_v26 = vadd.f32 %v1119_v30, %v2342_v4  ;;  %v2596_v36 = vld [vmem:[#allocation11_spill] sm:$0xff] }
 0x205   : > { %1242 = vst [vmem:[#allocation7 + $0x140] sm:$0xff] %v1178_v61  ;;  %1243 = vst [vmem:[#allocation7 + $0x148] sm:$0xff] %v1179_v0  ;;  %v1184_v40 = vadd.f32 %v1120_v31, %v2596_v36  ;;  %v2597_v39 = vld [vmem:[#allocation12_spill] sm:$0xff]  ;;  %v1122_v45 = vld [vmem:[#allocation7 + $0x180] sm:$0xff] }
 0x206   : > { %v1185_v41 = vadd.f32 %v1121_v44, %v2597_v39  ;;  %v1123_v48 = vld [vmem:[#allocation7 + $0x188] sm:$0xff]  ;;  %v1124_v50 = vld [vmem:[#allocation7 + $0x190] sm:$0xff]  ;;  %1244 = vst [vmem:[#allocation7 + $0x150] sm:$0xff] %v1180_v8  ;;  %1245 = vst [vmem:[#allocation7 + $0x158] sm:$0xff] %v1181_v13 }
 0x207   : > { %1246 = vst [vmem:[#allocation7 + $0x160] sm:$0xff] %v1182_v22  ;;  %v2598_v49 = vld [vmem:[#allocation13_spill] sm:$0xff]  ;;  %v2599_v62 = vld [vmem:[#allocation14_spill] sm:$0xff]  ;;  %v2600_v47 = vld [vmem:[#allocation15_spill] sm:$0xff] }
 0x208   : > { %v1186_v54 = vadd.f32 %v1122_v45, %v2598_v49  ;;  %v1187_v2 = vadd.f32 %v1123_v48, %v2599_v62  ;;  %v1188_v51 = vadd.f32 %v1124_v50, %v2600_v47  ;;  %v1125_v53 = vld [vmem:[#allocation7 + $0x198] sm:$0xff]  ;;  %v1126_v3 = vld [vmem:[#allocation7 + $0x1a0] sm:$0xff]  ;;  %v1127_v5 = vld [vmem:[#allocation7 + $0x1a8] sm:$0xff]  ;;  %1247 = vst [vmem:[#allocation7 + $0x168] sm:$0xff] %v1183_v26 }
 0x209   : > { %1248 = vst [vmem:[#allocation7 + $0x170] sm:$0xff] %v1184_v40  ;;  %1249 = vst [vmem:[#allocation7 + $0x178] sm:$0xff] %v1185_v41  ;;  %v2601_v4 = vld [vmem:[#allocation16_spill] sm:$0xff]  ;;  %v2602_v57 = vld [vmem:[#allocation17_spill] sm:$0xff] }
 0x20a   : > { %v1189_v9 = vadd.f32 %v1125_v53, %v2601_v4  ;;  %v1190_v59 = vadd.f32 %v1126_v3, %v2602_v57  ;;  %v2603_v63 = vld [vmem:[#allocation18_spill] sm:$0xff]  ;;  %v1128_v38 = vld [vmem:[#allocation7 + $0x1b0] sm:$0xff]  ;;  %v1130_v1 = vld [vmem:[#allocation7 + $0x1c0] sm:$0xff]  ;;  %1250 = vst [vmem:[#allocation7 + $0x180] sm:$0xff] %v1186_v54 }
 0x20b   : > { %v1191_v18 = vadd.f32 %v1127_v5, %v2603_v63  ;;  %v1129_v58 = vld [vmem:[#allocation7 + $0x1b8] sm:$0xff]  ;;  %1251 = vst [vmem:[#allocation7 + $0x188] sm:$0xff] %v1187_v2  ;;  %1252 = vst [vmem:[#allocation7 + $0x190] sm:$0xff] %v1188_v51  ;;  %v2604_v7 = vld [vmem:[#allocation19_spill] sm:$0xff] }
 0x20c   : > { %v1192_v10 = vadd.f32 %v1128_v38, %v2604_v7  ;;  %v2605_v11 = vld [vmem:[#allocation20_spill] sm:$0xff]  ;;  %v2606_v17 = vld [vmem:[#allocation21_spill] sm:$0xff]  ;;  %v1133_v6 = vld [vmem:[#allocation7 + $0x1d8] sm:$0xff]  ;;  %1253 = vst [vmem:[#allocation7 + $0x198] sm:$0xff] %v1189_v9 }
 0x20d   : > { %v1193_v15 = vadd.f32 %v1129_v58, %v2605_v11  ;;  %v1194_v16 = vadd.f32 %v1130_v1, %v2606_v17  ;;  %v1131_v19 = vld [vmem:[#allocation7 + $0x1c8] sm:$0xff]  ;;  %v1132_v25 = vld [vmem:[#allocation7 + $0x1d0] sm:$0xff]  ;;  %1254 = vst [vmem:[#allocation7 + $0x1a0] sm:$0xff] %v1190_v59  ;;  %1255 = vst [vmem:[#allocation7 + $0x1a8] sm:$0xff] %v1191_v18  ;;  %v1197_v34 = vadd.f32 %v1133_v6, %v2370_v20 }
 0x20e   : > { %v2607_v12 = vld [vmem:[#allocation22_spill] sm:$0xff]  ;;  %v1196_v28 = vadd.f32 %v1132_v25, %v2368_v14  ;;  %v1134_v37 = vld [vmem:[#allocation7 + $0x1e0] sm:$0xff]  ;;  %v1135_v21 = vld [vmem:[#allocation7 + $0x1e8] sm:$0xff]  ;;  %1256 = vst [vmem:[#allocation7 + $0x1b0] sm:$0xff] %v1192_v10 }
 0x20f   : > { %v1195_v24 = vadd.f32 %v1131_v19, %v2607_v12  ;;  %v1136_v23 = vld [vmem:[#allocation7 + $0x1f0] sm:$0xff]  ;;  %1257 = vst [vmem:[#allocation7 + $0x1b8] sm:$0xff] %v1193_v15  ;;  %1258 = vst [vmem:[#allocation7 + $0x1c0] sm:$0xff] %v1194_v16  ;;  %v1198_v27 = vadd.f32 %v1134_v37, %v2372_v32  ;;  %v2608_v43 = vld [vmem:[#allocation23_spill] sm:$0xff] }
 0x210   : > { %v1199_v46 = vadd.f32 %v1135_v21, %v2608_v43  ;;  %v2609_v52 = vld [vmem:[#allocation24_spill] sm:$0xff]  ;;  %v1137_v60 = vld [vmem:[#allocation7 + $0x1f8] sm:$0xff]  ;;  %1260 = vst [vmem:[#allocation7 + $0x1d0] sm:$0xff] %v1196_v28  ;;  %1261 = vst [vmem:[#allocation7 + $0x1d8] sm:$0xff] %v1197_v34 }
 0x211   : > { %v1200_v42 = vadd.f32 %v1136_v23, %v2609_v52  ;;  %1259 = vst [vmem:[#allocation7 + $0x1c8] sm:$0xff] %v1195_v24  ;;  %v2610_v56 = vld [vmem:[#allocation25_spill] sm:$0xff]  ;;  %1262 = vst [vmem:[#allocation7 + $0x1e0] sm:$0xff] %v1198_v27 }
 0x212   : > { %v1201_v14 = vadd.f32 %v1137_v60, %v2610_v56  ;;  %1263 = vst [vmem:[#allocation7 + $0x1e8] sm:$0xff] %v1199_v46 }
 0x213   : > { %1264 = vst [vmem:[#allocation7 + $0x1f0] sm:$0xff] %v1200_v42 }
 0x214   : > { %1265 = vst [vmem:[#allocation7 + $0x1f8] sm:$0xff] %v1201_v14 }
 0x215 PF: > { %p2512_p4 = scmp.eq.s32.totalorder %s1377_s15, 7  ;;  %s1818_s20 = smov [#allocation7]  }
 0x216   : > { %s1278_s22 = sshll.u32 %s1818_s20, 4  ;;  %s1279_s22 = int_to_ptr.vmem [resolvable:$true] %s1278_s22 }
 0x217   : > { %s1725_s5 = scalar_lea.vmem %s1279_s22, 8192  ;;  %p1732_p0 = scmp.lt.s32.totalorder %s1279_s22, %s1279_s22 }
 0x218   : > { %p1726_p8 = scmp.ne.s32.totalorder %s1279_s22, %s1725_s5  ;;  %p1733_p10 = scmp.lt.s32.totalorder %s1725_s5, %s1725_s5 }
 0x21a   : > { %p1727_p2 = pnand %p1726_p8, %p2512_p4  ;;  %p1734_p5 = por %p1733_p10, %p1732_p0 }
 0x21c   : > { %p1728_p3 = pneg %p1727_p2 }
 0x21e   : > { %p1735_p6 = pnand %p1734_p5, %p1728_p3 }
 0x220   : > { %1738 = shalt.err (!%p1735_p6)
}
 0x221   : > { %s1739_s15 = scalar_lea.hbm %s2558_s2, 8192 }
 0x222   : > { %p1740_p11 = scmp.ne.s32.totalorder %s2558_s2, %s1739_s15  ;;  %p1745_p7 = scmp.lt.u32.totalorder %s1739_s15, %s2558_s2 }
 0x224   : > { %p1741_p13 = pnand %p1740_p11, %p2512_p4 }
 0x226   : > { %p1742_p1 = pneg %p1741_p13 }
 0x228   : > { %p1747_p9 = pnand %p1745_p7, %p1742_p1 }
 0x22a   : > { %1750 = shalt.err (!%p1747_p9)
}
 0x22b   : > { %s1819_s26 = smov 256   ;;  %s1820_s28 = smov 16  }
 0x22c   : > { %1596 = dma.vmem_to_hbm [thread:$0]  (%p2512_p4), %s1279_s22, 8192, %s2558_s2, [#allocation4], %s1819_s26, %s1819_s26, %s1820_s28  }
 0x22d   : > { %1784 = dma.done.wait (%p2512_p4), [#allocation4], 8192  }
 0x22e   : > { %1786 = vsyncadd (%p2512_p4), [#allocation4], 4294959104 }
 0x22f PF: > { %s19_s14 = sadd.s32 1, %s1809_s14   ;;  %s2612_s9 = smov %s1793_s10 }
 0x230   : > { %p16_p12 = scmp.ge.s32.totalorder %s19_s14, 10   ;;  %s2613_s10 = smov %s1797_s11 }
 0x231   : > { %s2614_s11 = smov %s1887_s21  ;;  %s2615_s12 = smov %s1805_s13 }
 0x232   : > { %s2616_s13 = smov %s2618_s16  ;;  %18 = sbr.rel (!%p16_p12) target bundleno = 7 (0x7), region = 87 }
 0x239   :  { %1294 = vsyncpa [#allocation3], 1 }
 0x23a   :  { %1296 = vsyncpa [#allocation3 + $0x1], 1 }
 0x23b   :  { %1297 = vsyncpa [#allocation6], 1 }
 0x23c   :  { %1299 = vsyncpa [#allocation6 + $0x1], 1 }
 0x23d   :  { %1300 = vsyncpa [#allocation4], 1 }
 0x23e   :  { %1302 = vsyncpa [#allocation4 + $0x1], 1 }

</bundles_post_ra>
